<compile_context>
chip_gen: v5e
topology: v5e:2x2
jax: 0.10.0
libtpu: 0.0.40
codegen_flags: <defaults>
</compile_context>

<pallas_src>
import functools
import math

import jax
import jax.numpy as jnp
from jax import lax
from jax.experimental import pallas as pl
from jax.experimental.pallas import tpu as pltpu

_ROPE_BASE = 10000.0
_VMEM_LIMIT = 32 * 1024 * 1024  # raise scoped-VMEM limit (v5e default is 16 MiB)


def _pick_tile(n: int, target: int) -> int:
    """Largest power-of-two tile <= target that divides n (fallback: full dim)."""
    if n <= target:
        return n
    t = target
    while t >= 8:
        if n % t == 0:
            return t
        t //= 2
    return n


# -----------------------------------------------------------------------------
# Kernel 1: tiled matmul + bias  (out = x @ w + b)
# -----------------------------------------------------------------------------
def _matmul_bias_kernel(x_ref, w_ref, b_ref, o_ref, acc_ref):
    k = pl.program_id(2)

    @pl.when(k == 0)
    def _():
        acc_ref[...] = jnp.zeros(acc_ref.shape, jnp.float32)

    acc_ref[...] += jnp.dot(x_ref[...], w_ref[...],
                            preferred_element_type=jnp.float32)

    @pl.when(k == pl.num_programs(2) - 1)
    def _():
        o_ref[...] = (acc_ref[...] + b_ref[...].astype(jnp.float32)).astype(o_ref.dtype)


def _linear(x2d: jnp.ndarray, w: jnp.ndarray, b: jnp.ndarray) -> jnp.ndarray:
    M, K = x2d.shape
    _, N = w.shape
    tm = _pick_tile(M, 256)
    tn = _pick_tile(N, 256)
    tk = _pick_tile(K, 512)
    b2d = b.reshape(1, N)

    return pl.pallas_call(
        _matmul_bias_kernel,
        out_shape=jax.ShapeDtypeStruct((M, N), x2d.dtype),
        grid_spec=pltpu.PrefetchScalarGridSpec(
            num_scalar_prefetch=0,
            grid=(M // tm, N // tn, K // tk),
            in_specs=[
                pl.BlockSpec((tm, tk), lambda i, j, k: (i, k)),
                pl.BlockSpec((tk, tn), lambda i, j, k: (k, j)),
                pl.BlockSpec((1, tn), lambda i, j, k: (0, j)),
            ],
            out_specs=pl.BlockSpec((tm, tn), lambda i, j, k: (i, j)),
            scratch_shapes=[pltpu.VMEM((tm, tn), jnp.float32)],
        ),
        compiler_params=pltpu.CompilerParams(
            dimension_semantics=("parallel", "parallel", "arbitrary"),
            vmem_limit_bytes=_VMEM_LIMIT,
        ),
    )(x2d, w, b2d)


# -----------------------------------------------------------------------------
# Kernel 2: flash-style causal attention with RoPE fused in-kernel
# -----------------------------------------------------------------------------
def _rope_rotate(x, cos, sin, half):
    # x: (T, Hd); cos/sin: (T, 1) — per-(position, head) angle, same for every
    # channel of the head (faithful to the reference apply_rope broadcasting).
    x1 = x[:, :half]
    x2 = x[:, half:]
    return jnp.concatenate([x1 * cos - x2 * sin, x2 * cos + x1 * sin], axis=-1)


def _attention(q, k, v, cos_bh, sin_bh, head_dim):
    BH, S, Hd = q.shape
    half = Hd // 2
    T = _pick_tile(S, 128)  # q-tile == kv-tile so the causal tile-skip is exact
    inv_scale = 1.0 / math.sqrt(head_dim)

    def kernel(q_ref, k_ref, v_ref, cq_ref, sq_ref, ck_ref, sk_ref,
               o_ref, m_sc, l_sc, acc_sc):
        qi = pl.program_id(1)
        ki = pl.program_id(2)

        @pl.when(ki == 0)
        def _():
            m_sc[...] = jnp.full(m_sc.shape, -jnp.inf, jnp.float32)
            l_sc[...] = jnp.zeros(l_sc.shape, jnp.float32)
            acc_sc[...] = jnp.zeros(acc_sc.shape, jnp.float32)

        # Skip kv tiles entirely above the causal diagonal (T_q == T_kv).
        @pl.when(ki <= qi)
        def _():
            qt = q_ref[0].astype(jnp.float32)                    # (T, Hd)
            kt = k_ref[0].astype(jnp.float32)                    # (T, Hd)
            q_rot = _rope_rotate(qt, cq_ref[0], sq_ref[0], half)
            k_rot = _rope_rotate(kt, ck_ref[0], sk_ref[0], half)

            s = lax.dot_general(q_rot, k_rot, (((1,), (1,)), ((), ())),
                                preferred_element_type=jnp.float32) * inv_scale
            row = qi * T + lax.broadcasted_iota(jnp.int32, (T, T), 0)
            col = ki * T + lax.broadcasted_iota(jnp.int32, (T, T), 1)
            s = jnp.where(row >= col, s, -jnp.inf)

            m_prev = m_sc[...]
            m_new = jnp.maximum(m_prev, s.max(axis=-1, keepdims=True))
            alpha = jnp.exp(m_prev - m_new)
            p = jnp.exp(s - m_new)
            l_sc[...] = alpha * l_sc[...] + p.sum(axis=-1, keepdims=True)
            acc_sc[...] = alpha * acc_sc[...] + jnp.dot(
                p, v_ref[0].astype(jnp.float32), preferred_element_type=jnp.float32)
            m_sc[...] = m_new

        @pl.when(ki == pl.num_programs(2) - 1)
        def _():
            o_ref[0] = (acc_sc[...] / l_sc[...]).astype(o_ref.dtype)

    return pl.pallas_call(
        kernel,
        out_shape=jax.ShapeDtypeStruct((BH, S, Hd), q.dtype),
        grid_spec=pltpu.PrefetchScalarGridSpec(
            num_scalar_prefetch=0,
            grid=(BH, S // T, S // T),
            in_specs=[
                pl.BlockSpec((1, T, Hd), lambda b, qi, ki: (b, qi, 0)),  # q
                pl.BlockSpec((1, T, Hd), lambda b, qi, ki: (b, ki, 0)),  # k
                pl.BlockSpec((1, T, Hd), lambda b, qi, ki: (b, ki, 0)),  # v
                pl.BlockSpec((1, T, 1), lambda b, qi, ki: (b, qi, 0)),   # cos (q rows)
                pl.BlockSpec((1, T, 1), lambda b, qi, ki: (b, qi, 0)),   # sin (q rows)
                pl.BlockSpec((1, T, 1), lambda b, qi, ki: (b, ki, 0)),   # cos (k rows)
                pl.BlockSpec((1, T, 1), lambda b, qi, ki: (b, ki, 0)),   # sin (k rows)
            ],
            out_specs=pl.BlockSpec((1, T, Hd), lambda b, qi, ki: (b, qi, 0)),
            scratch_shapes=[
                pltpu.VMEM((T, 1), jnp.float32),   # running max m
                pltpu.VMEM((T, 1), jnp.float32),   # running denom l
                pltpu.VMEM((T, Hd), jnp.float32),  # running numerator acc
            ],
        ),
        compiler_params=pltpu.CompilerParams(
            dimension_semantics=("parallel", "parallel", "arbitrary"),
            vmem_limit_bytes=_VMEM_LIMIT,
        ),
    )(q, k, v, cos_bh, sin_bh, cos_bh, sin_bh)


# -----------------------------------------------------------------------------
# Forward pass wrapper (mirrors VanillaAttention.forward)
# -----------------------------------------------------------------------------
@functools.partial(jax.jit, static_argnames=("num_heads",))
def vanilla_attention_forward(x, params, *, num_heads):
    B, S, D = x.shape
    H = num_heads
    Hd = D // H
    half = Hd // 2
    # The reference apply_rope broadcast ([1,L,half,1] * [B,L,N,half]) only runs
    # when num_heads == head_dim // 2; we require the same.
    assert H == half, "reference apply_rope requires num_heads == head_dim // 2"

    # ---- fused QKV projection (one Pallas matmul) ---------------------------
    wqkv = jnp.concatenate([params["wq"], params["wk"], params["wv"]], axis=1)
    bqkv = jnp.concatenate([params["bq"], params["bk"], params["bv"]])
    qkv = _linear(x.reshape(B * S, D), wqkv, bqkv)               # [B*S, 3D]
    qkv = qkv.reshape(B, S, 3, H, Hd)
    q = jnp.transpose(qkv[:, :, 0], (0, 2, 1, 3)).reshape(B * H, S, Hd)
    k = jnp.transpose(qkv[:, :, 1], (0, 2, 1, 3)).reshape(B * H, S, Hd)
    v = jnp.transpose(qkv[:, :, 2], (0, 2, 1, 3)).reshape(B * H, S, Hd)

    # ---- RoPE angle tables (per-(position, head) scalar, see note above) ----
    positions = jnp.arange(S, dtype=jnp.float32)
    fraction = 2.0 * jnp.arange(half, dtype=jnp.float32) / Hd
    timescale = _ROPE_BASE ** fraction                           # [half] == [H]
    ang = positions[:, None] / timescale[None, :]                # [S, H]
    cos_hs = jnp.cos(ang).T[:, :, None]                          # [H, S, 1]
    sin_hs = jnp.sin(ang).T[:, :, None]
    cos_bh = jnp.broadcast_to(cos_hs[None], (B, H, S, 1)).reshape(B * H, S, 1)
    sin_bh = jnp.broadcast_to(sin_hs[None], (B, H, S, 1)).reshape(B * H, S, 1)

    # ---- causal attention with fused RoPE ------------------------------------
    ctx = _attention(q, k, v, cos_bh, sin_bh, Hd)                # [B*H, S, Hd]
    ctx = jnp.transpose(ctx.reshape(B, H, S, Hd), (0, 2, 1, 3)).reshape(B * S, D)

    # ---- output projection ----------------------------------------------------
    out = _linear(ctx, params["wo"], params["bo"])
    return out.reshape(B, S, D)


# -----------------------------------------------------------------------------
# Pure-JAX reference (mirrors the PyTorch module, including its apply_rope
# broadcasting) for correctness checking.
# -----------------------------------------------------------------------------
def _apply_rope_ref(inputs, positions, base=_ROPE_BASE):
    head_dim = inputs.shape[-1]
    half = head_dim // 2
    fraction = 2.0 * jnp.arange(half, dtype=jnp.float32) / head_dim
    timescale = base ** fraction
    sinusoid = positions[:, None] / timescale[None, :]           # [L, half]
    sinusoid = sinusoid[None, :, :, None]                        # [1, L, half, 1]
    sin, cos = jnp.sin(sinusoid), jnp.cos(sinusoid)
    first, second = inputs[..., :half], inputs[..., half:]
    return jnp.concatenate([first * cos - second * sin,
                            second * cos + first * sin], axis=-1)


def _reference_forward(x, params, num_heads):
    B, S, D = x.shape
    H, Hd = num_heads, D // num_heads
    q = (x @ params["wq"] + params["bq"]).reshape(B, S, H, Hd)
    k = (x @ params["wk"] + params["bk"]).reshape(B, S, H, Hd)
    v = (x @ params["wv"] + params["bv"]).reshape(B, S, H, Hd)
    pos = jnp.arange(S, dtype=jnp.float32)
    q = _apply_rope_ref(q, pos)
    k = _apply_rope_ref(k, pos)
    q, k, v = (jnp.transpose(t, (0, 2, 1, 3)) for t in (q, k, v))
    scores = jnp.einsum("bhqd,bhkd->bhqk", q, k) / math.sqrt(Hd)
    mask = jnp.tril(jnp.ones((S, S), dtype=bool))
    scores = jnp.where(mask[None, None], scores, -jnp.inf)
    attn = jax.nn.softmax(scores, axis=-1)
    ctx = jnp.einsum("bhqk,bhkd->bhqd", attn, v)
    ctx = jnp.transpose(ctx, (0, 2, 1, 3)).reshape(B, S, D)
    return ctx @ params["wo"] + params["bo"]


if __name__ == "__main__":
    # Small but TPU-friendly shapes: head_dim = 16, num_heads = head_dim // 2 = 8
    # (the only configuration under which the reference apply_rope runs).
    B, S, D, H = 2, 64, 128, 8

    key = jax.random.PRNGKey(0)
    kx, kq, kk, kv, ko, kbq, kbk, kbv, kbo = jax.random.split(key, 9)
    wscale = 1.0 / math.sqrt(D)
    params = {
        "wq": jax.random.normal(kq, (D, D), jnp.float32) * wscale,
        "wk": jax.random.normal(kk, (D, D), jnp.float32) * wscale,
        "wv": jax.random.normal(kv, (D, D), jnp.float32) * wscale,
        "wo": jax.random.normal(ko, (D, D), jnp.float32) * wscale,
        "bq": jax.random.normal(kbq, (D,), jnp.float32) * 0.01,
        "bk": jax.random.normal(kbk, (D,), jnp.float32) * 0.01,
        "bv": jax.random.normal(kbv, (D,), jnp.float32) * 0.01,
        "bo": jax.random.normal(kbo, (D,), jnp.float32) * 0.01,
    }
    x = jax.random.normal(kx, (B, S, D), jnp.float32)

    out = jax.block_until_ready(vanilla_attention_forward(x, params, num_heads=H))

    with jax.default_matmul_precision("float32"):
        ref = jax.block_until_ready(_reference_forward(x, params, H))

    assert out.shape == (B, S, D) and out.dtype == x.dtype
    max_err = float(jnp.max(jnp.abs(out - ref)))
    assert jnp.allclose(out, ref, atol=2e-2, rtol=2e-2), f"max abs err = {max_err}"
    print("KERNEL_OK")
</pallas_src>

<mosaic_0001>
module attributes {stable_mosaic.version = 11 : i64} {
  func.func @_matmul_bias_kernel(%arg0: i32, %arg1: i32, %arg2: i32, %arg3: memref<128x128xf32, #tpu.memory_space<vmem>>, %arg4: memref<128x128xf32, #tpu.memory_space<vmem>>, %arg5: memref<1x128xf32, #tpu.memory_space<vmem>>, %arg6: memref<128x128xf32, #tpu.memory_space<vmem>>, %arg7: memref<128x128xf32, #tpu.memory_space<vmem>>) attributes {dimension_semantics = [#tpu.dimension_semantics<parallel>, #tpu.dimension_semantics<parallel>, #tpu.dimension_semantics<arbitrary>], iteration_bounds = array<i64: 1, 3, 1>, scalar_prefetch = 0 : i64, scratch_operands = 1 : i64, tpu.core_type = #tpu.core_type<tc>, window_params = [{transform_indices = @transform_0, window_bounds = array<i64: 128, 128>}, {transform_indices = @transform_1, window_bounds = array<i64: 128, 128>}, {transform_indices = @transform_2, window_bounds = array<i64: 1, 128>}, {transform_indices = @transform_3, window_bounds = array<i64: 128, 128>}]} {
    %c0_i32 = arith.constant 0 : i32
    %0 = arith.cmpi eq, %arg2, %c0_i32 : i32
    %1 = arith.extui %0 : i1 to i32
    %c0_i32_0 = arith.constant 0 : i32
    %2 = arith.cmpi ne, %1, %c0_i32_0 : i32
    scf.if %2 {
      %cst_10 = arith.constant 0.000000e+00 : f32
      %12 = vector.broadcast %cst_10 : f32 to vector<128x128xf32>
      %c0_11 = arith.constant 0 : index
      %c0_12 = arith.constant 0 : index
      %13 = vector.load %arg7[%c0_11, %c0_12] : memref<128x128xf32, #tpu.memory_space<vmem>>, vector<128x128xf32>
      tpu.vector_store %arg7[%c0_11, %c0_12], %12 {strides = array<i32>} : memref<128x128xf32, #tpu.memory_space<vmem>>, vector<128x128xf32>,
    } else {
    }
    %c0 = arith.constant 0 : index
    %c0_1 = arith.constant 0 : index
    %3 = vector.load %arg7[%c0, %c0_1] : memref<128x128xf32, #tpu.memory_space<vmem>>, vector<128x128xf32>
    %c0_2 = arith.constant 0 : index
    %c0_3 = arith.constant 0 : index
    %4 = vector.load %arg3[%c0_2, %c0_3] : memref<128x128xf32, #tpu.memory_space<vmem>>, vector<128x128xf32>
    %c0_4 = arith.constant 0 : index
    %c0_5 = arith.constant 0 : index
    %5 = vector.load %arg4[%c0_4, %c0_5] : memref<128x128xf32, #tpu.memory_space<vmem>>, vector<128x128xf32>
    %cst = arith.constant dense<0.000000e+00> : vector<128x128xf32>
    %6 = tpu.matmul %4, %5, %cst {dimension_numbers = #tpu.dot_dimension_numbers<[1], [0], [0], [1], [0, 0, 1, 1], [], []>} : vector<128x128xf32>, vector<128x128xf32>, vector<128x128xf32> -> vector<128x128xf32>
    %7 = arith.addf %3, %6 : vector<128x128xf32>
    %c0_6 = arith.constant 0 : index
    %c0_7 = arith.constant 0 : index
    %8 = vector.load %arg7[%c0_6, %c0_7] : memref<128x128xf32, #tpu.memory_space<vmem>>, vector<128x128xf32>
    tpu.vector_store %arg7[%c0_6, %c0_7], %7 {strides = array<i32>} : memref<128x128xf32, #tpu.memory_space<vmem>>, vector<128x128xf32>,
    %c0_i32_8 = arith.constant 0 : i32
    %9 = arith.cmpi eq, %arg2, %c0_i32_8 : i32
    %10 = arith.extui %9 : i1 to i32
    %c0_i32_9 = arith.constant 0 : i32
    %11 = arith.cmpi ne, %10, %c0_i32_9 : i32
    scf.if %11 {
      %c0_10 = arith.constant 0 : index
      %c0_11 = arith.constant 0 : index
      %12 = vector.load %arg7[%c0_10, %c0_11] : memref<128x128xf32, #tpu.memory_space<vmem>>, vector<128x128xf32>
      %c0_12 = arith.constant 0 : index
      %c0_13 = arith.constant 0 : index
      %13 = vector.load %arg5[%c0_12, %c0_13] : memref<1x128xf32, #tpu.memory_space<vmem>>, vector<1x128xf32>
      %14 = vector.broadcast %13 : vector<1x128xf32> to vector<128x128xf32>
      %15 = arith.addf %12, %14 : vector<128x128xf32>
      %c0_14 = arith.constant 0 : index
      %c0_15 = arith.constant 0 : index
      %16 = vector.load %arg6[%c0_14, %c0_15] : memref<128x128xf32, #tpu.memory_space<vmem>>, vector<128x128xf32>
      tpu.vector_store %arg6[%c0_14, %c0_15], %15 {strides = array<i32>} : memref<128x128xf32, #tpu.memory_space<vmem>>, vector<128x128xf32>,
    } else {
    }
    return
  }
  func.func @transform_0(%arg0: i32, %arg1: i32, %arg2: i32) -> (i32, i32) {
    %c0_i32 = arith.constant 0 : i32
    return %arg0, %arg2 : i32, i32
  }
  func.func @transform_1(%arg0: i32, %arg1: i32, %arg2: i32) -> (i32, i32) {
    %c0_i32 = arith.constant 0 : i32
    return %arg2, %arg1 : i32, i32
  }
  func.func @transform_2(%arg0: i32, %arg1: i32, %arg2: i32) -> (i32, i32) {
    %c0_i32 = arith.constant 0 : i32
    %c0_i32_0 = arith.constant 0 : i32
    return %c0_i32, %arg1 : i32, i32
  }
  func.func @transform_3(%arg0: i32, %arg1: i32, %arg2: i32) -> (i32, i32) {
    %c0_i32 = arith.constant 0 : i32
    return %arg0, %arg1 : i32, i32
  }
}

module attributes {stable_mosaic.version = 11 : i64} {
  func.func @kernel(%arg0: i32, %arg1: i32, %arg2: i32, %arg3: memref<1x64x16xf32, #tpu.memory_space<vmem>>, %arg4: memref<1x64x16xf32, #tpu.memory_space<vmem>>, %arg5: memref<1x64x16xf32, #tpu.memory_space<vmem>>, %arg6: memref<1x64x1xf32, #tpu.memory_space<vmem>>, %arg7: memref<1x64x1xf32, #tpu.memory_space<vmem>>, %arg8: memref<1x64x1xf32, #tpu.memory_space<vmem>>, %arg9: memref<1x64x1xf32, #tpu.memory_space<vmem>>, %arg10: memref<1x64x16xf32, #tpu.memory_space<vmem>>, %arg11: memref<64x1xf32, #tpu.memory_space<vmem>>, %arg12: memref<64x1xf32, #tpu.memory_space<vmem>>, %arg13: memref<64x16xf32, #tpu.memory_space<vmem>>) attributes {dimension_semantics = [#tpu.dimension_semantics<parallel>, #tpu.dimension_semantics<parallel>, #tpu.dimension_semantics<arbitrary>], iteration_bounds = array<i64: 16, 1, 1>, scalar_prefetch = 0 : i64, scratch_operands = 3 : i64, tpu.core_type = #tpu.core_type<tc>, window_params = [{transform_indices = @transform_0, window_bounds = array<i64: 1, 64, 16>}, {transform_indices = @transform_1, window_bounds = array<i64: 1, 64, 16>}, {transform_indices = @transform_2, window_bounds = array<i64: 1, 64, 16>}, {transform_indices = @transform_3, window_bounds = array<i64: 1, 64, 1>}, {transform_indices = @transform_4, window_bounds = array<i64: 1, 64, 1>}, {transform_indices = @transform_5, window_bounds = array<i64: 1, 64, 1>}, {transform_indices = @transform_6, window_bounds = array<i64: 1, 64, 1>}, {transform_indices = @transform_7, window_bounds = array<i64: 1, 64, 16>}]} {
    %c0_i32 = arith.constant 0 : i32
    %0 = arith.cmpi eq, %arg2, %c0_i32 : i32
    %1 = arith.extui %0 : i1 to i32
    %c0_i32_0 = arith.constant 0 : i32
    %2 = arith.cmpi ne, %1, %c0_i32_0 : i32
    scf.if %2 {
      %cst = arith.constant 0xFF800000 : f32
      %9 = vector.broadcast %cst : f32 to vector<64x1xf32>
      %c0 = arith.constant 0 : index
      %c0_4 = arith.constant 0 : index
      %10 = vector.load %arg11[%c0, %c0_4] : memref<64x1xf32, #tpu.memory_space<vmem>>, vector<64x1xf32>
      tpu.vector_store %arg11[%c0, %c0_4], %9 {strides = array<i32>} : memref<64x1xf32, #tpu.memory_space<vmem>>, vector<64x1xf32>,
      %cst_5 = arith.constant 0.000000e+00 : f32
      %11 = vector.broadcast %cst_5 : f32 to vector<64x1xf32>
      %c0_6 = arith.constant 0 : index
      %c0_7 = arith.constant 0 : index
      %12 = vector.load %arg12[%c0_6, %c0_7] : memref<64x1xf32, #tpu.memory_space<vmem>>, vector<64x1xf32>
      tpu.vector_store %arg12[%c0_6, %c0_7], %11 {strides = array<i32>} : memref<64x1xf32, #tpu.memory_space<vmem>>, vector<64x1xf32>,
      %cst_8 = arith.constant 0.000000e+00 : f32
      %13 = vector.broadcast %cst_8 : f32 to vector<64x16xf32>
      %c0_9 = arith.constant 0 : index
      %c0_10 = arith.constant 0 : index
      %14 = vector.load %arg13[%c0_9, %c0_10] : memref<64x16xf32, #tpu.memory_space<vmem>>, vector<64x16xf32>
      tpu.vector_store %arg13[%c0_9, %c0_10], %13 {strides = array<i32>} : memref<64x16xf32, #tpu.memory_space<vmem>>, vector<64x16xf32>,
    } else {
    }
    %3 = arith.cmpi sle, %arg2, %arg1 : i32
    %4 = arith.extui %3 : i1 to i32
    %c0_i32_1 = arith.constant 0 : i32
    %5 = arith.cmpi ne, %4, %c0_i32_1 : i32
    scf.if %5 {
      %c0 = arith.constant 0 : index
      %c0_4 = arith.constant 0 : index
      %c0_5 = arith.constant 0 : index
      %9 = vector.load %arg3[%c0, %c0_4, %c0_5] : memref<1x64x16xf32, #tpu.memory_space<vmem>>, vector<1x64x16xf32>
      %10 = vector.shape_cast %9 : vector<1x64x16xf32> to vector<64x16xf32>
      %c0_6 = arith.constant 0 : index
      %c0_7 = arith.constant 0 : index
      %c0_8 = arith.constant 0 : index
      %11 = vector.load %arg4[%c0_6, %c0_7, %c0_8] : memref<1x64x16xf32, #tpu.memory_space<vmem>>, vector<1x64x16xf32>
      %12 = vector.shape_cast %11 : vector<1x64x16xf32> to vector<64x16xf32>
      %c0_9 = arith.constant 0 : index
      %c0_10 = arith.constant 0 : index
      %c0_11 = arith.constant 0 : index
      %13 = vector.load %arg6[%c0_9, %c0_10, %c0_11] : memref<1x64x1xf32, #tpu.memory_space<vmem>>, vector<1x64x1xf32>
      %14 = vector.shape_cast %13 : vector<1x64x1xf32> to vector<64x1xf32>
      %c0_12 = arith.constant 0 : index
      %c0_13 = arith.constant 0 : index
      %c0_14 = arith.constant 0 : index
      %15 = vector.load %arg7[%c0_12, %c0_13, %c0_14] : memref<1x64x1xf32, #tpu.memory_space<vmem>>, vector<1x64x1xf32>
      %16 = vector.shape_cast %15 : vector<1x64x1xf32> to vector<64x1xf32>
      %17 = vector.extract_strided_slice %10 {offsets = [0, 0], sizes = [64, 8], strides = [1, 1]} : vector<64x16xf32> to vector<64x8xf32>
      %18 = vector.extract_strided_slice %10 {offsets = [0, 8], sizes = [64, 8], strides = [1, 1]} : vector<64x16xf32> to vector<64x8xf32>
      %19 = vector.broadcast %14 : vector<64x1xf32> to vector<64x8xf32>
      %20 = arith.mulf %17, %19 : vector<64x8xf32>
      %21 = vector.broadcast %16 : vector<64x1xf32> to vector<64x8xf32>
      %22 = arith.mulf %18, %21 : vector<64x8xf32>
      %23 = arith.subf %20, %22 : vector<64x8xf32>
      %24 = vector.broadcast %14 : vector<64x1xf32> to vector<64x8xf32>
      %25 = arith.mulf %18, %24 : vector<64x8xf32>
      %26 = vector.broadcast %16 : vector<64x1xf32> to vector<64x8xf32>
      %27 = arith.mulf %17, %26 : vector<64x8xf32>
      %28 = arith.addf %25, %27 : vector<64x8xf32>
      %29 = tpu.concatenate %23, %28 in 1 : vector<64x8xf32>, vector<64x8xf32> -> vector<64x16xf32>
      %c0_15 = arith.constant 0 : index
      %c0_16 = arith.constant 0 : index
      %c0_17 = arith.constant 0 : index
      %30 = vector.load %arg8[%c0_15, %c0_16, %c0_17] : memref<1x64x1xf32, #tpu.memory_space<vmem>>, vector<1x64x1xf32>
      %31 = vector.shape_cast %30 : vector<1x64x1xf32> to vector<64x1xf32>
      %c0_18 = arith.constant 0 : index
      %c0_19 = arith.constant 0 : index
      %c0_20 = arith.constant 0 : index
      %32 = vector.load %arg9[%c0_18, %c0_19, %c0_20] : memref<1x64x1xf32, #tpu.memory_space<vmem>>, vector<1x64x1xf32>
      %33 = vector.shape_cast %32 : vector<1x64x1xf32> to vector<64x1xf32>
      %34 = vector.extract_strided_slice %12 {offsets = [0, 0], sizes = [64, 8], strides = [1, 1]} : vector<64x16xf32> to vector<64x8xf32>
      %35 = vector.extract_strided_slice %12 {offsets = [0, 8], sizes = [64, 8], strides = [1, 1]} : vector<64x16xf32> to vector<64x8xf32>
      %36 = vector.broadcast %31 : vector<64x1xf32> to vector<64x8xf32>
      %37 = arith.mulf %34, %36 : vector<64x8xf32>
      %38 = vector.broadcast %33 : vector<64x1xf32> to vector<64x8xf32>
      %39 = arith.mulf %35, %38 : vector<64x8xf32>
      %40 = arith.subf %37, %39 : vector<64x8xf32>
      %41 = vector.broadcast %31 : vector<64x1xf32> to vector<64x8xf32>
      %42 = arith.mulf %35, %41 : vector<64x8xf32>
      %43 = vector.broadcast %33 : vector<64x1xf32> to vector<64x8xf32>
      %44 = arith.mulf %34, %43 : vector<64x8xf32>
      %45 = arith.addf %42, %44 : vector<64x8xf32>
      %46 = tpu.concatenate %40, %45 in 1 : vector<64x8xf32>, vector<64x8xf32> -> vector<64x16xf32>
      %cst = arith.constant dense<0.000000e+00> : vector<64x64xf32>
      %47 = tpu.matmul %29, %46, %cst {dimension_numbers = #tpu.dot_dimension_numbers<[1], [1], [0], [0], [0, 0, 1, 0], [], []>} : vector<64x16xf32>, vector<64x16xf32>, vector<64x64xf32> -> vector<64x64xf32>
      %cst_21 = arith.constant 2.500000e-01 : f32
      %48 = vector.broadcast %cst_21 : f32 to vector<64x64xf32>
      %49 = arith.mulf %47, %48 : vector<64x64xf32>
      %c64_i32 = arith.constant 64 : i32
      %50 = arith.muli %arg1, %c64_i32 : i32
      %51 = tpu.iota {dimensions = array<i32: 0>} : vector<64x64xi32>
      %52 = vector.broadcast %50 : i32 to vector<64x64xi32>
      %53 = arith.addi %52, %51 : vector<64x64xi32>
      %c64_i32_22 = arith.constant 64 : i32
      %54 = arith.muli %arg2, %c64_i32_22 : i32
      %55 = tpu.iota {dimensions = array<i32: 1>} : vector<64x64xi32>
      %56 = vector.broadcast %54 : i32 to vector<64x64xi32>
      %57 = arith.addi %56, %55 : vector<64x64xi32>
      %58 = arith.cmpi sge, %53, %57 : vector<64x64xi32>
      %cst_23 = arith.constant 0xFF800000 : f32
      %59 = vector.broadcast %cst_23 : f32 to vector<64x64xf32>
      %60 = arith.select %58, %49, %59 : vector<64x64xi1>, vector<64x64xf32>
      %c0_24 = arith.constant 0 : index
      %c0_25 = arith.constant 0 : index
      %61 = vector.load %arg11[%c0_24, %c0_25] : memref<64x1xf32, #tpu.memory_space<vmem>>, vector<64x1xf32>
      %cst_26 = arith.constant dense<0xFF800000> : vector<64xf32>
      %62 = vector.multi_reduction <maximumf>, %60, %cst_26 [1] : vector<64x64xf32> to vector<64xf32>
      %63 = vector.shape_cast %62 : vector<64xf32> to vector<64x1xf32>
      %64 = arith.maximumf %61, %63 : vector<64x1xf32>
      %65 = arith.subf %61, %64 : vector<64x1xf32>
      %66 = math.exp %65 : vector<64x1xf32>
      %67 = vector.broadcast %64 : vector<64x1xf32> to vector<64x64xf32>
      %68 = arith.subf %60, %67 : vector<64x64xf32>
      %69 = math.exp %68 : vector<64x64xf32>
      %c0_27 = arith.constant 0 : index
      %c0_28 = arith.constant 0 : index
      %70 = vector.load %arg12[%c0_27, %c0_28] : memref<64x1xf32, #tpu.memory_space<vmem>>, vector<64x1xf32>
      %71 = arith.mulf %66, %70 : vector<64x1xf32>
      %cst_29 = arith.constant dense<0.000000e+00> : vector<64xf32>
      %72 = vector.multi_reduction <add>, %69, %cst_29 [1] : vector<64x64xf32> to vector<64xf32>
      %73 = vector.shape_cast %72 : vector<64xf32> to vector<64x1xf32>
      %74 = arith.addf %71, %73 : vector<64x1xf32>
      %c0_30 = arith.constant 0 : index
      %c0_31 = arith.constant 0 : index
      %75 = vector.load %arg12[%c0_30, %c0_31] : memref<64x1xf32, #tpu.memory_space<vmem>>, vector<64x1xf32>
      tpu.vector_store %arg12[%c0_30, %c0_31], %74 {strides = array<i32>} : memref<64x1xf32, #tpu.memory_space<vmem>>, vector<64x1xf32>,
      %c0_32 = arith.constant 0 : index
      %c0_33 = arith.constant 0 : index
      %76 = vector.load %arg13[%c0_32, %c0_33] : memref<64x16xf32, #tpu.memory_space<vmem>>, vector<64x16xf32>
      %77 = vector.broadcast %66 : vector<64x1xf32> to vector<64x16xf32>
      %78 = arith.mulf %77, %76 : vector<64x16xf32>
      %c0_34 = arith.constant 0 : index
      %c0_35 = arith.constant 0 : index
      %c0_36 = arith.constant 0 : index
      %79 = vector.load %arg5[%c0_34, %c0_35, %c0_36] : memref<1x64x16xf32, #tpu.memory_space<vmem>>, vector<1x64x16xf32>
      %80 = vector.shape_cast %79 : vector<1x64x16xf32> to vector<64x16xf32>
      %cst_37 = arith.constant dense<0.000000e+00> : vector<64x16xf32>
      %81 = tpu.matmul %69, %80, %cst_37 {dimension_numbers = #tpu.dot_dimension_numbers<[1], [0], [0], [1], [0, 0, 1, 1], [], []>} : vector<64x64xf32>, vector<64x16xf32>, vector<64x16xf32> -> vector<64x16xf32>
      %82 = arith.addf %78, %81 : vector<64x16xf32>
      %c0_38 = arith.constant 0 : index
      %c0_39 = arith.constant 0 : index
      %83 = vector.load %arg13[%c0_38, %c0_39] : memref<64x16xf32, #tpu.memory_space<vmem>>, vector<64x16xf32>
      tpu.vector_store %arg13[%c0_38, %c0_39], %82 {strides = array<i32>} : memref<64x16xf32, #tpu.memory_space<vmem>>, vector<64x16xf32>,
      %c0_40 = arith.constant 0 : index
      %c0_41 = arith.constant 0 : index
      %84 = vector.load %arg11[%c0_40, %c0_41] : memref<64x1xf32, #tpu.memory_space<vmem>>, vector<64x1xf32>
      tpu.vector_store %arg11[%c0_40, %c0_41], %64 {strides = array<i32>} : memref<64x1xf32, #tpu.memory_space<vmem>>, vector<64x1xf32>,
    } else {
    }
    %c0_i32_2 = arith.constant 0 : i32
    %6 = arith.cmpi eq, %arg2, %c0_i32_2 : i32
    %7 = arith.extui %6 : i1 to i32
    %c0_i32_3 = arith.constant 0 : i32
    %8 = arith.cmpi ne, %7, %c0_i32_3 : i32
    scf.if %8 {
      %c0 = arith.constant 0 : index
      %c0_4 = arith.constant 0 : index
      %9 = vector.load %arg13[%c0, %c0_4] : memref<64x16xf32, #tpu.memory_space<vmem>>, vector<64x16xf32>
      %c0_5 = arith.constant 0 : index
      %c0_6 = arith.constant 0 : index
      %10 = vector.load %arg12[%c0_5, %c0_6] : memref<64x1xf32, #tpu.memory_space<vmem>>, vector<64x1xf32>
      %11 = vector.broadcast %10 : vector<64x1xf32> to vector<64x16xf32>
      %12 = arith.divf %9, %11 : vector<64x16xf32>
      %c0_7 = arith.constant 0 : index
      %c0_8 = arith.constant 0 : index
      %c0_9 = arith.constant 0 : index
      %13 = vector.load %arg10[%c0_7, %c0_8, %c0_9] : memref<1x64x16xf32, #tpu.memory_space<vmem>>, vector<1x64x16xf32>
      %14 = vector.shape_cast %13 : vector<1x64x16xf32> to vector<64x16xf32>
      %15 = vector.shape_cast %12 : vector<64x16xf32> to vector<1x64x16xf32>
      tpu.vector_store %arg10[%c0_7, %c0_8, %c0_9], %15 {strides = array<i32>} : memref<1x64x16xf32, #tpu.memory_space<vmem>>, vector<1x64x16xf32>,
    } else {
    }
    return
  }
  func.func @transform_0(%arg0: i32, %arg1: i32, %arg2: i32) -> (i32, i32, i32) {
    %c0_i32 = arith.constant 0 : i32
    %c0_i32_0 = arith.constant 0 : i32
    return %arg0, %arg1, %c0_i32 : i32, i32, i32
  }
  func.func @transform_1(%arg0: i32, %arg1: i32, %arg2: i32) -> (i32, i32, i32) {
    %c0_i32 = arith.constant 0 : i32
    %c0_i32_0 = arith.constant 0 : i32
    return %arg0, %arg2, %c0_i32 : i32, i32, i32
  }
  func.func @transform_2(%arg0: i32, %arg1: i32, %arg2: i32) -> (i32, i32, i32) {
    %c0_i32 = arith.constant 0 : i32
    %c0_i32_0 = arith.constant 0 : i32
    return %arg0, %arg2, %c0_i32 : i32, i32, i32
  }
  func.func @transform_3(%arg0: i32, %arg1: i32, %arg2: i32) -> (i32, i32, i32) {
    %c0_i32 = arith.constant 0 : i32
    %c0_i32_0 = arith.constant 0 : i32
    return %arg0, %arg1, %c0_i32 : i32, i32, i32
  }
  func.func @transform_4(%arg0: i32, %arg1: i32, %arg2: i32) -> (i32, i32, i32) {
    %c0_i32 = arith.constant 0 : i32
    %c0_i32_0 = arith.constant 0 : i32
    return %arg0, %arg1, %c0_i32 : i32, i32, i32
  }
  func.func @transform_5(%arg0: i32, %arg1: i32, %arg2: i32) -> (i32, i32, i32) {
    %c0_i32 = arith.constant 0 : i32
    %c0_i32_0 = arith.constant 0 : i32
    return %arg0, %arg2, %c0_i32 : i32, i32, i32
  }
  func.func @transform_6(%arg0: i32, %arg1: i32, %arg2: i32) -> (i32, i32, i32) {
    %c0_i32 = arith.constant 0 : i32
    %c0_i32_0 = arith.constant 0 : i32
    return %arg0, %arg2, %c0_i32 : i32, i32, i32
  }
  func.func @transform_7(%arg0: i32, %arg1: i32, %arg2: i32) -> (i32, i32, i32) {
    %c0_i32 = arith.constant 0 : i32
    %c0_i32_0 = arith.constant 0 : i32
    return %arg0, %arg1, %c0_i32 : i32, i32, i32
  }
}

module attributes {stable_mosaic.version = 11 : i64} {
  func.func @_matmul_bias_kernel(%arg0: i32, %arg1: i32, %arg2: i32, %arg3: memref<128x128xf32, #tpu.memory_space<vmem>>, %arg4: memref<128x128xf32, #tpu.memory_space<vmem>>, %arg5: memref<1x128xf32, #tpu.memory_space<vmem>>, %arg6: memref<128x128xf32, #tpu.memory_space<vmem>>, %arg7: memref<128x128xf32, #tpu.memory_space<vmem>>) attributes {dimension_semantics = [#tpu.dimension_semantics<parallel>, #tpu.dimension_semantics<parallel>, #tpu.dimension_semantics<arbitrary>], iteration_bounds = array<i64: 1, 1, 1>, scalar_prefetch = 0 : i64, scratch_operands = 1 : i64, tpu.core_type = #tpu.core_type<tc>, window_params = [{transform_indices = @transform_0, window_bounds = array<i64: 128, 128>}, {transform_indices = @transform_1, window_bounds = array<i64: 128, 128>}, {transform_indices = @transform_2, window_bounds = array<i64: 1, 128>}, {transform_indices = @transform_3, window_bounds = array<i64: 128, 128>}]} {
    %c0_i32 = arith.constant 0 : i32
    %0 = arith.cmpi eq, %arg2, %c0_i32 : i32
    %1 = arith.extui %0 : i1 to i32
    %c0_i32_0 = arith.constant 0 : i32
    %2 = arith.cmpi ne, %1, %c0_i32_0 : i32
    scf.if %2 {
      %cst_10 = arith.constant 0.000000e+00 : f32
      %12 = vector.broadcast %cst_10 : f32 to vector<128x128xf32>
      %c0_11 = arith.constant 0 : index
      %c0_12 = arith.constant 0 : index
      %13 = vector.load %arg7[%c0_11, %c0_12] : memref<128x128xf32, #tpu.memory_space<vmem>>, vector<128x128xf32>
      tpu.vector_store %arg7[%c0_11, %c0_12], %12 {strides = array<i32>} : memref<128x128xf32, #tpu.memory_space<vmem>>, vector<128x128xf32>,
    } else {
    }
    %c0 = arith.constant 0 : index
    %c0_1 = arith.constant 0 : index
    %3 = vector.load %arg7[%c0, %c0_1] : memref<128x128xf32, #tpu.memory_space<vmem>>, vector<128x128xf32>
    %c0_2 = arith.constant 0 : index
    %c0_3 = arith.constant 0 : index
    %4 = vector.load %arg3[%c0_2, %c0_3] : memref<128x128xf32, #tpu.memory_space<vmem>>, vector<128x128xf32>
    %c0_4 = arith.constant 0 : index
    %c0_5 = arith.constant 0 : index
    %5 = vector.load %arg4[%c0_4, %c0_5] : memref<128x128xf32, #tpu.memory_space<vmem>>, vector<128x128xf32>
    %cst = arith.constant dense<0.000000e+00> : vector<128x128xf32>
    %6 = tpu.matmul %4, %5, %cst {dimension_numbers = #tpu.dot_dimension_numbers<[1], [0], [0], [1], [0, 0, 1, 1], [], []>} : vector<128x128xf32>, vector<128x128xf32>, vector<128x128xf32> -> vector<128x128xf32>
    %7 = arith.addf %3, %6 : vector<128x128xf32>
    %c0_6 = arith.constant 0 : index
    %c0_7 = arith.constant 0 : index
    %8 = vector.load %arg7[%c0_6, %c0_7] : memref<128x128xf32, #tpu.memory_space<vmem>>, vector<128x128xf32>
    tpu.vector_store %arg7[%c0_6, %c0_7], %7 {strides = array<i32>} : memref<128x128xf32, #tpu.memory_space<vmem>>, vector<128x128xf32>,
    %c0_i32_8 = arith.constant 0 : i32
    %9 = arith.cmpi eq, %arg2, %c0_i32_8 : i32
    %10 = arith.extui %9 : i1 to i32
    %c0_i32_9 = arith.constant 0 : i32
    %11 = arith.cmpi ne, %10, %c0_i32_9 : i32
    scf.if %11 {
      %c0_10 = arith.constant 0 : index
      %c0_11 = arith.constant 0 : index
      %12 = vector.load %arg7[%c0_10, %c0_11] : memref<128x128xf32, #tpu.memory_space<vmem>>, vector<128x128xf32>
      %c0_12 = arith.constant 0 : index
      %c0_13 = arith.constant 0 : index
      %13 = vector.load %arg5[%c0_12, %c0_13] : memref<1x128xf32, #tpu.memory_space<vmem>>, vector<1x128xf32>
      %14 = vector.broadcast %13 : vector<1x128xf32> to vector<128x128xf32>
      %15 = arith.addf %12, %14 : vector<128x128xf32>
      %c0_14 = arith.constant 0 : index
      %c0_15 = arith.constant 0 : index
      %16 = vector.load %arg6[%c0_14, %c0_15] : memref<128x128xf32, #tpu.memory_space<vmem>>, vector<128x128xf32>
      tpu.vector_store %arg6[%c0_14, %c0_15], %15 {strides = array<i32>} : memref<128x128xf32, #tpu.memory_space<vmem>>, vector<128x128xf32>,
    } else {
    }
    return
  }
  func.func @transform_0(%arg0: i32, %arg1: i32, %arg2: i32) -> (i32, i32) {
    %c0_i32 = arith.constant 0 : i32
    return %arg0, %arg2 : i32, i32
  }
  func.func @transform_1(%arg0: i32, %arg1: i32, %arg2: i32) -> (i32, i32) {
    %c0_i32 = arith.constant 0 : i32
    return %arg2, %arg1 : i32, i32
  }
  func.func @transform_2(%arg0: i32, %arg1: i32, %arg2: i32) -> (i32, i32) {
    %c0_i32 = arith.constant 0 : i32
    %c0_i32_0 = arith.constant 0 : i32
    return %c0_i32, %arg1 : i32, i32
  }
  func.func @transform_3(%arg0: i32, %arg1: i32, %arg2: i32) -> (i32, i32) {
    %c0_i32 = arith.constant 0 : i32
    return %arg0, %arg1 : i32, i32
  }
}

</mosaic_0001>

<bundles_post_ra>
// kernel: vanilla_attention_forward.3
= control target key start
LH: loop header
LB: loop body
LE: loop exit
PB: predicated region body
PF: predicated region fallthrough
CT: control target
= control target key end

     0   :  { %s922_s12 = smov 0   ;;  %s924_s13 = smov 0   ;;  %s1129_s0 = inlined_call_operand.vmem [shape: f32[128,128], index: 0, kind: input, shape index: {}]   ;;  %s1130_s1 = inlined_call_operand.vmem [shape: f32[128,384], index: 1, kind: input, shape index: {}]   ;;  %s1131_s2 = inlined_call_operand.vmem [shape: f32[1,384], index: 2, kind: input, shape index: {}]   ;;  %s1132_s3 = inlined_call_operand.vmem [shape: f32[128,384], index: 3, kind: output, shape index: {}]  }
   0x1   :  { %s926_s14 = smov 0   ;;  %s928_s15 = smov 0  }
   0x2   :  { %s930_s16 = smov 0  }
   0x3 LB: > { %s28_s17 = sadd.s32 1, %s896_s15  ;;  %s759_s18 = sadd.s32 4294967295, %s900_s16   ;;  %s900_s16 = sphi %s930_s16, %s13_s16   ;;  %s896_s15 = sphi %s928_s15, %s1137_s15   ;;  %s892_s14 = sphi %s926_s14, %s1136_s14   ;;  %s888_s13 = sphi %s924_s13, %s1135_s13   ;;  %s884_s12 = sphi %s922_s12, %s1134_s12  }
   0x4   : > { %p30_p0 = scmp.ge.s32.totalorder %s28_s17, 3  ;;  %p76_p1 = scmp.ne.s32.totalorder %s888_s13, %s884_s12 }
   0x5   : > { %p77_p2 = scmp.eq.s32.totalorder %s900_s16, 0  ;;  %p134_p4 = scmp.eq.s32.totalorder %s759_s18, 2 }
   0x6   : > { %s1139_s17 = smov (%p30_p0, %s28_s17), 0  ;;  %s69_s20 = sadd.s32 1, %s888_s13 }
   0x7   : > { %p78_p3 = por %p77_p2, %p76_p1  ;;  %s65_s19 = ssub.s32 %s896_s15, %s1139_s17 }
   0x8   : > { %p67_p5 = scmp.eq.s32.totalorder %s65_s19, 0  ;;  %p957_p6 = por %p134_p4, %p76_p1 }
   0x9   : > { %p763_p7 = scmp.ge.s32.totalorder %s900_s16, 3 }
   0xa   : > { %s962_s22 = scalar_select %p67_p5, %s888_s13, %s69_s20  }
   0xb   : > { %168 = sbr.rel (%p763_p7) target bundleno = 36 (0x24), region = 20 }
  0x10   : > { %171 = sbr.rel (!%p78_p3) target bundleno = 36 (0x24), region = 24  ;;  %s173_s23 = sand.u32 (%p78_p3), 1, %s888_s13  }
  0x11   : > { %s765_s24 = sshll.u32 (%p78_p3), %s896_s15, 3  ;;  %s764_s25 = sshll.u32 (%p78_p3), %s173_s23, 7 }
  0x12   : > { %s970_s28 = scalar_lea.vmem (%p78_p3), %s1130_s1, %s765_s24  ;;  %s175_s29 = scalar_lea.vmem (%p78_p3), [#allocation3], %s764_s25 }
  0x13   : > { %v239_v0 = vld [vmem:[%s970_s28] sm:$0xff] (%p78_p3)  ;;  %v241_v1 = vld [vmem:[%s970_s28 + $0x18] sm:$0xff] (%p78_p3)  ;;  %v243_v2 = vld [vmem:[%s970_s28 + $0x30] sm:$0xff] (%p78_p3) }
  0x14   : > { %240 = vst [vmem:[%s175_s29] sm:$0xff] (%p78_p3), %v239_v0  ;;  %v245_v3 = vld [vmem:[%s970_s28 + $0x48] sm:$0xff] (%p78_p3)  ;;  %v247_v4 = vld [vmem:[%s970_s28 + $0x60] sm:$0xff] (%p78_p3)  ;;  %v249_v5 = vld [vmem:[%s970_s28 + $0x78] sm:$0xff] (%p78_p3) }
  0x15   : > { %242 = vst [vmem:[%s175_s29 + $0x8] sm:$0xff] %v241_v1  ;;  %v251_v6 = vld [vmem:[%s970_s28 + $0x90] sm:$0xff]  ;;  %v253_v7 = vld [vmem:[%s970_s28 + $0xa8] sm:$0xff]  ;;  %v255_v8 = vld [vmem:[%s970_s28 + $0xc0] sm:$0xff] }
  0x16   : > { %244 = vst [vmem:[%s175_s29 + $0x10] sm:$0xff] %v243_v2  ;;  %v257_v9 = vld [vmem:[%s970_s28 + $0xd8] sm:$0xff]  ;;  %v259_v10 = vld [vmem:[%s970_s28 + $0xf0] sm:$0xff]  ;;  %v261_v11 = vld [vmem:[%s970_s28 + $0x108] sm:$0xff] }
  0x17   : > { %246 = vst [vmem:[%s175_s29 + $0x18] sm:$0xff] %v245_v3  ;;  %v263_v12 = vld [vmem:[%s970_s28 + $0x120] sm:$0xff]  ;;  %v265_v13 = vld [vmem:[%s970_s28 + $0x138] sm:$0xff]  ;;  %v267_v14 = vld [vmem:[%s970_s28 + $0x150] sm:$0xff] }
  0x18   : > { %248 = vst [vmem:[%s175_s29 + $0x20] sm:$0xff] %v247_v4  ;;  %v269_v15 = vld [vmem:[%s970_s28 + $0x168] sm:$0xff] }
  0x19   : > { %250 = vst [vmem:[%s175_s29 + $0x28] sm:$0xff] %v249_v5 }
  0x1a   : > { %252 = vst [vmem:[%s175_s29 + $0x30] sm:$0xff] %v251_v6 }
  0x1b   : > { %254 = vst [vmem:[%s175_s29 + $0x38] sm:$0xff] %v253_v7 }
  0x1c   : > { %256 = vst [vmem:[%s175_s29 + $0x40] sm:$0xff] %v255_v8 }
  0x1d   : > { %258 = vst [vmem:[%s175_s29 + $0x48] sm:$0xff] %v257_v9 }
  0x1e   : > { %260 = vst [vmem:[%s175_s29 + $0x50] sm:$0xff] %v259_v10 }
  0x1f   : > { %262 = vst [vmem:[%s175_s29 + $0x58] sm:$0xff] %v261_v11 }
  0x20   : > { %264 = vst [vmem:[%s175_s29 + $0x60] sm:$0xff] %v263_v12 }
  0x21   : > { %266 = vst [vmem:[%s175_s29 + $0x68] sm:$0xff] %v265_v13 }
  0x22   : > { %268 = vst [vmem:[%s175_s29 + $0x70] sm:$0xff] %v267_v14 }
  0x23   : > { %270 = vst [vmem:[%s175_s29 + $0x78] sm:$0xff] %v269_v15 }
  0x24 PF: > { %p766_p8 = scmp.ge.s32.totalorder %s900_s16, 1  ;;  %p281_p9 = scmp.lt.s32.totalorder %s900_s16, 4 }
  0x26   : > { %p282_p10 = pnand %p766_p8, %p281_p9 }
  0x27   : > { %s288_s30 = sand.u32 (!%p282_p10), 1, %s884_s12   ;;  %p331_p11 = scmp.lt.s32.totalorder (!%p282_p10), %s892_s14, 2 }
  0x28   : > { %285 = sbr.rel (%p282_p10) target bundleno = 245 (0xf5), region = 66  ;;  %s992_s4 = sshll.u32 (!%p282_p10), %s288_s30, 7 }
  0x29   : > { %s995_s5 = scalar_lea.vmem (!%p282_p10), [#allocation3], %s992_s4  ;;  %s1074_s10 = scalar_lea.vmem (!%p282_p10), [#allocation4], %s992_s4 }
  0x2d   : > { %v402_v16 = vld [vmem:[%s995_s5 + $0x78] sm:$0xff]  ;;  %v401_v17 = vld [vmem:[%s995_s5 + $0x70] sm:$0xff]  ;;  %s1000_s6 = scalar_select %p331_p11, %s892_s14, 2  ;;  %v400_v18 = vld [vmem:[%s995_s5 + $0x68] sm:$0xff] }
  0x2e   : > { %774 = vmatpush.msra.mxu2 %v402_v16  ;;  %775 = vmatpush.msra.mxu3 %v402_v16  ;;  %v399_v19 = vld [vmem:[%s995_s5 + $0x60] sm:$0xff]  ;;  %v398_v20 = vld [vmem:[%s995_s5 + $0x58] sm:$0xff]  ;;  %v397_v21 = vld [vmem:[%s995_s5 + $0x50] sm:$0xff]  ;;  %s770_s4 = sshll.u32 (%p957_p6), %s892_s14, 3 }
  0x2f   : > { %403 = vmatpush.msra.mxu0 %v402_v16  ;;  %773 = vmatpush.msra.mxu1 %v402_v16  ;;  %s333_s9 = scalar_lea.vmem %s1131_s2, %s1000_s6  ;;  %v396_v22 = vld [vmem:[%s995_s5 + $0x48] sm:$0xff]  ;;  %v395_v23 = vld [vmem:[%s995_s5 + $0x40] sm:$0xff]  ;;  %v394_v24 = vld [vmem:[%s995_s5 + $0x38] sm:$0xff]  ;;  %s566_s11 = scalar_lea.vmem (%p957_p6), %s1132_s3, %s770_s4 }
  0x30   : > { %777 = vmatpush.msra.mxu2 %v401_v17  ;;  %778 = vmatpush.msra.mxu3 %v401_v17  ;;  %v393_v25 = vld [vmem:[%s995_s5 + $0x30] sm:$0xff]  ;;  %v392_v26 = vld [vmem:[%s995_s5 + $0x28] sm:$0xff]  ;;  %v391_v27 = vld [vmem:[%s995_s5 + $0x20] sm:$0xff] }
  0x31   : > { %404 = vmatpush.msra.mxu0 %v401_v17  ;;  %776 = vmatpush.msra.mxu1 %v401_v17  ;;  %v390_v28 = vld [vmem:[%s995_s5 + $0x18] sm:$0xff]  ;;  %v389_v29 = vld [vmem:[%s995_s5 + $0x10] sm:$0xff]  ;;  %v388_v30 = vld [vmem:[%s995_s5 + $0x8] sm:$0xff] }
  0x32   : > { %780 = vmatpush.msra.mxu2 %v400_v18  ;;  %781 = vmatpush.msra.mxu3 %v400_v18  ;;  %v387_v31 = vld [vmem:[%s995_s5] sm:$0xff]  ;;  %v380_v36 = vld [vmem:[%s1129_s0 + $0x48] sm:$0xff]  ;;  %v381_v40 = vld [vmem:[%s1129_s0 + $0x50] sm:$0xff] }
  0x33   : > { %405 = vmatpush.msra.mxu0 %v400_v18  ;;  %779 = vmatpush.msra.mxu1 %v400_v18  ;;  %v379_v32 = vld [vmem:[%s1129_s0 + $0x40] sm:$0xff]  ;;  %v384_v37 = vld [vmem:[%s1129_s0 + $0x68] sm:$0xff]  ;;  %v385_v41 = vld [vmem:[%s1129_s0 + $0x70] sm:$0xff] }
  0x34   : > { %783 = vmatpush.msra.mxu2 %v399_v19  ;;  %784 = vmatpush.msra.mxu3 %v399_v19  ;;  %v383_v33 = vld [vmem:[%s1129_s0 + $0x60] sm:$0xff]  ;;  %v372_v38 = vld [vmem:[%s1129_s0 + $0x8] sm:$0xff]  ;;  %v373_v42 = vld [vmem:[%s1129_s0 + $0x10] sm:$0xff] }
  0x35   : > { %406 = vmatpush.msra.mxu0 %v399_v19  ;;  %782 = vmatpush.msra.mxu1 %v399_v19  ;;  %v371_v34 = vld [vmem:[%s1129_s0] sm:$0xff]  ;;  %v376_v39 = vld [vmem:[%s1129_s0 + $0x28] sm:$0xff]  ;;  %v377_v43 = vld [vmem:[%s1129_s0 + $0x30] sm:$0xff] }
  0x36   : > { %786 = vmatpush.msra.mxu2 %v398_v20  ;;  %787 = vmatpush.msra.mxu3 %v398_v20  ;;  %v375_v35 = vld [vmem:[%s1129_s0 + $0x20] sm:$0xff]  ;;  %v382_v44 = vld [vmem:[%s1129_s0 + $0x58] sm:$0xff] }
  0x37   : > { %407 = vmatpush.msra.mxu0 %v398_v20  ;;  %785 = vmatpush.msra.mxu1 %v398_v20  ;;  %v386_v45 = vld [vmem:[%s1129_s0 + $0x78] sm:$0xff]  ;;  %v861_v48 = vld [vmem:[%s333_s9] ss:$0 sm:$0xff] }
  0x38   : > { %789 = vmatpush.msra.mxu2 %v397_v21  ;;  %790 = vmatpush.msra.mxu3 %v397_v21  ;;  %v374_v46 = vld [vmem:[%s1129_s0 + $0x18] sm:$0xff] }
  0x39   : > { %408 = vmatpush.msra.mxu0 %v397_v21  ;;  %788 = vmatpush.msra.mxu1 %v397_v21  ;;  %v378_v47 = vld [vmem:[%s1129_s0 + $0x38] sm:$0xff] }
  0x3a   : > { %792 = vmatpush.msra.mxu2 %v396_v22  ;;  %793 = vmatpush.msra.mxu3 %v396_v22 }
  0x3b   : > { %409 = vmatpush.msra.mxu0 %v396_v22  ;;  %791 = vmatpush.msra.mxu1 %v396_v22 }
  0x3c   : > { %795 = vmatpush.msra.mxu2 %v395_v23  ;;  %796 = vmatpush.msra.mxu3 %v395_v23 }
  0x3d   : > { %410 = vmatpush.msra.mxu0 %v395_v23  ;;  %794 = vmatpush.msra.mxu1 %v395_v23 }
  0x3e   : > { %798 = vmatpush.msra.mxu2 %v394_v24  ;;  %799 = vmatpush.msra.mxu3 %v394_v24 }
  0x3f   : > { %411 = vmatpush.msra.mxu0 %v394_v24  ;;  %797 = vmatpush.msra.mxu1 %v394_v24 }
  0x40   : > { %801 = vmatpush.msra.mxu2 %v393_v25  ;;  %802 = vmatpush.msra.mxu3 %v393_v25 }
  0x41   : > { %412 = vmatpush.msra.mxu0 %v393_v25  ;;  %800 = vmatpush.msra.mxu1 %v393_v25 }
  0x42   : > { %804 = vmatpush.msra.mxu2 %v392_v26  ;;  %805 = vmatpush.msra.mxu3 %v392_v26 }
  0x43   : > { %413 = vmatpush.msra.mxu0 %v392_v26  ;;  %803 = vmatpush.msra.mxu1 %v392_v26 }
  0x44   : > { %807 = vmatpush.msra.mxu2 %v391_v27  ;;  %808 = vmatpush.msra.mxu3 %v391_v27 }
  0x45   : > { %414 = vmatpush.msra.mxu0 %v391_v27  ;;  %806 = vmatpush.msra.mxu1 %v391_v27 }
  0x46   : > { %810 = vmatpush.msra.mxu2 %v390_v28  ;;  %811 = vmatpush.msra.mxu3 %v390_v28 }
  0x47   : > { %415 = vmatpush.msra.mxu0 %v390_v28  ;;  %809 = vmatpush.msra.mxu1 %v390_v28 }
  0x48   : > { %813 = vmatpush.msra.mxu2 %v389_v29  ;;  %814 = vmatpush.msra.mxu3 %v389_v29 }
  0x49   : > { %416 = vmatpush.msra.mxu0 %v389_v29  ;;  %812 = vmatpush.msra.mxu1 %v389_v29 }
  0x4a   : > { %816 = vmatpush.msra.mxu2 %v388_v30  ;;  %817 = vmatpush.msra.mxu3 %v388_v30 }
  0x4b   : > { %417 = vmatpush.msra.mxu0 %v388_v30  ;;  %815 = vmatpush.msra.mxu1 %v388_v30 }
  0x4c   : > { %819 = vmatpush.msra.mxu2 %v387_v31  ;;  %820 = vmatpush.msra.mxu3 %v387_v31 }
  0x4d   : > { %443 = vmatmul.f32.vlgmr.msra.gmra.mxu2 %v379_v32  ;;  %455 = vmatmul.f32.vlgmr.msra.gmra.mxu3 %v383_v33 }
  0x4e   : > { %418 = vmatpush.msra.mxu0 %v387_v31  ;;  %818 = vmatpush.msra.mxu1 %v387_v31 }
  0x4f   : > { %419 = vmatmul.f32.vlgmr.msra.gmra.mxu0 %v371_v34  ;;  %431 = vmatmul.f32.vlgmr.msra.gmra.mxu1 %v375_v35 }
  0x55   : > { %446 = vmatmul.f32.gmra.mxu2 %v380_v36  ;;  %458 = vmatmul.f32.gmra.mxu3 %v384_v37 }
  0x57   : > { %422 = vmatmul.f32.gmra.mxu0 %v372_v38  ;;  %434 = vmatmul.f32.gmra.mxu1 %v376_v39 }
  0x5d   : > { %449 = vmatmul.f32.gmra.mxu2 %v381_v40  ;;  %461 = vmatmul.f32.gmra.mxu3 %v385_v41 }
  0x5f   : > { %425 = vmatmul.f32.gmra.mxu0 %v373_v42  ;;  %437 = vmatmul.f32.gmra.mxu1 %v377_v43 }
  0x65   : > { %452 = vmatmul.f32.gmra.mxu2 %v382_v44  ;;  %464 = vmatmul.f32.gmra.mxu3 %v386_v45 }
  0x67   : > { %428 = vmatmul.f32.gmra.mxu0 %v374_v46  ;;  %440 = vmatmul.f32.gmra.mxu1 %v378_v47 }
  0xcc   : > { %v420_v49 = vpop.f32.mrf.mxu0  ;;  %v432_v50 = vpop.f32.mrf.mxu1 }
  0xcd   : > { %v523_v51 = vadd.f32 %v861_v48, %v420_v49  ;;  %v527_v52 = vadd.f32 %v861_v48, %v432_v50 }
  0xcf   : > { %539 = vst [vmem:[%s1074_s10] sm:$0xff] %v523_v51 }
  0xd0   : > { %543 = vst [vmem:[%s1074_s10 + $0x20] sm:$0xff] %v527_v52  ;;  %v444_v53 = vpop.f32.mrf.mxu2  ;;  %v456_v54 = vpop.f32.mrf.mxu3 }
  0xd1   : > { %v531_v55 = vadd.f32 %v861_v48, %v444_v53  ;;  %v535_v56 = vadd.f32 %v861_v48, %v456_v54 }
  0xd3   : > { %547 = vst [vmem:[%s1074_s10 + $0x40] sm:$0xff] %v531_v55 }
  0xd4   : > { %551 = vst [vmem:[%s1074_s10 + $0x60] sm:$0xff] %v535_v56  ;;  %v423_v57 = vpop.f32.mrf.mxu0  ;;  %v435_v58 = vpop.f32.mrf.mxu1 }
  0xd5   : > { %v524_v59 = vadd.f32 %v861_v48, %v423_v57  ;;  %v528_v60 = vadd.f32 %v861_v48, %v435_v58 }
  0xd6   : > { %v625_v17 = vld [vmem:[%s1074_s10] sm:$0xff] (%p957_p6) }
  0xd7   : > { %540 = vst [vmem:[%s1074_s10 + $0x8] sm:$0xff] %v524_v59  ;;  %v633_v21 = vld [vmem:[%s1074_s10 + $0x20] sm:$0xff] (%p957_p6) }
  0xd8   : > { %544 = vst [vmem:[%s1074_s10 + $0x28] sm:$0xff] %v528_v60  ;;  %v447_v61 = vpop.f32.mrf.mxu2  ;;  %v459_v62 = vpop.f32.mrf.mxu3 }
  0xd9   : > { %v532_v63 = vadd.f32 %v861_v48, %v447_v61  ;;  %v536_v0 = vadd.f32 %v861_v48, %v459_v62  ;;  %626 = vst [vmem:[%s566_s11] sm:$0xff] (%p957_p6), %v625_v17 }
  0xda   : > { %634 = vst [vmem:[%s566_s11 + $0x60] sm:$0xff] (%p957_p6), %v633_v21  ;;  %v641_v25 = vld [vmem:[%s1074_s10 + $0x40] sm:$0xff] (%p957_p6) }
  0xdb   : > { %548 = vst [vmem:[%s1074_s10 + $0x48] sm:$0xff] %v532_v63  ;;  %v649_v29 = vld [vmem:[%s1074_s10 + $0x60] sm:$0xff] (%p957_p6) }
  0xdc   : > { %552 = vst [vmem:[%s1074_s10 + $0x68] sm:$0xff] %v536_v0  ;;  %v426_v1 = vpop.f32.mrf.mxu0  ;;  %v438_v2 = vpop.f32.mrf.mxu1 }
  0xdd   : > { %v525_v3 = vadd.f32 %v861_v48, %v426_v1  ;;  %v529_v4 = vadd.f32 %v861_v48, %v438_v2  ;;  %642 = vst [vmem:[%s566_s11 + $0xc0] sm:$0xff] (%p957_p6), %v641_v25 }
  0xde   : > { %v627_v18 = vld [vmem:[%s1074_s10 + $0x8] sm:$0xff] (%p957_p6)  ;;  %650 = vst [vmem:[%s566_s11 + $0x120] sm:$0xff] (%p957_p6), %v649_v29 }
  0xdf   : > { %541 = vst [vmem:[%s1074_s10 + $0x10] sm:$0xff] %v525_v3  ;;  %v635_v22 = vld [vmem:[%s1074_s10 + $0x28] sm:$0xff] (%p957_p6) }
  0xe0   : > { %545 = vst [vmem:[%s1074_s10 + $0x30] sm:$0xff] %v529_v4  ;;  %v450_v5 = vpop.f32.mrf.mxu2  ;;  %v462_v6 = vpop.f32.mrf.mxu3 }
  0xe1   : > { %v533_v7 = vadd.f32 %v861_v48, %v450_v5  ;;  %v537_v8 = vadd.f32 %v861_v48, %v462_v6  ;;  %628 = vst [vmem:[%s566_s11 + $0x18] sm:$0xff] (%p957_p6), %v627_v18 }
  0xe2   : > { %636 = vst [vmem:[%s566_s11 + $0x78] sm:$0xff] (%p957_p6), %v635_v22  ;;  %v643_v26 = vld [vmem:[%s1074_s10 + $0x48] sm:$0xff] (%p957_p6) }
  0xe3   : > { %549 = vst [vmem:[%s1074_s10 + $0x50] sm:$0xff] %v533_v7  ;;  %v651_v30 = vld [vmem:[%s1074_s10 + $0x68] sm:$0xff] (%p957_p6) }
  0xe4   : > { %553 = vst [vmem:[%s1074_s10 + $0x70] sm:$0xff] %v537_v8  ;;  %v429_v9 = vpop.f32.mrf.mxu0  ;;  %v441_v10 = vpop.f32.mrf.mxu1 }
  0xe5   : > { %v526_v11 = vadd.f32 %v861_v48, %v429_v9  ;;  %v530_v12 = vadd.f32 %v861_v48, %v441_v10  ;;  %644 = vst [vmem:[%s566_s11 + $0xd8] sm:$0xff] (%p957_p6), %v643_v26 }
  0xe6   : > { %v629_v19 = vld [vmem:[%s1074_s10 + $0x10] sm:$0xff] (%p957_p6)  ;;  %652 = vst [vmem:[%s566_s11 + $0x138] sm:$0xff] (%p957_p6), %v651_v30 }
  0xe7   : > { %542 = vst [vmem:[%s1074_s10 + $0x18] sm:$0xff] %v526_v11  ;;  %v637_v23 = vld [vmem:[%s1074_s10 + $0x30] sm:$0xff] (%p957_p6) }
  0xe8   : > { %546 = vst [vmem:[%s1074_s10 + $0x38] sm:$0xff] %v530_v12  ;;  %v453_v13 = vpop.f32.mrf.mxu2  ;;  %v465_v14 = vpop.f32.mrf.mxu3  ;;  %561 = sbr.rel (!%p957_p6) target bundleno = 245 (0xf5), region = 82 }
  0xe9   : > { %v534_v15 = vadd.f32 %v861_v48, %v453_v13  ;;  %v538_v16 = vadd.f32 %v861_v48, %v465_v14  ;;  %630 = vst [vmem:[%s566_s11 + $0x30] sm:$0xff] (%p957_p6), %v629_v19 }
  0xea   : > { %638 = vst [vmem:[%s566_s11 + $0x90] sm:$0xff] (%p957_p6), %v637_v23  ;;  %v645_v27 = vld [vmem:[%s1074_s10 + $0x50] sm:$0xff] (%p957_p6) }
  0xeb   : > { %550 = vst [vmem:[%s1074_s10 + $0x58] sm:$0xff] %v534_v15  ;;  %v653_v31 = vld [vmem:[%s1074_s10 + $0x70] sm:$0xff] (%p957_p6) }
  0xec   : > { %554 = vst [vmem:[%s1074_s10 + $0x78] sm:$0xff] %v538_v16 }
  0xed   : > { %646 = vst [vmem:[%s566_s11 + $0xf0] sm:$0xff] %v645_v27 }
  0xee   : > { %v631_v20 = vld [vmem:[%s1074_s10 + $0x18] sm:$0xff]  ;;  %654 = vst [vmem:[%s566_s11 + $0x150] sm:$0xff] %v653_v31 }
  0xef   : > { %632 = vst [vmem:[%s566_s11 + $0x48] sm:$0xff] %v631_v20  ;;  %v639_v24 = vld [vmem:[%s1074_s10 + $0x38] sm:$0xff] }
  0xf0   : > { %640 = vst [vmem:[%s566_s11 + $0xa8] sm:$0xff] %v639_v24 }
  0xf2   : > { %v647_v28 = vld [vmem:[%s1074_s10 + $0x58] sm:$0xff] }
  0xf3   : > { %648 = vst [vmem:[%s566_s11 + $0x108] sm:$0xff] %v647_v28  ;;  %v655_v32 = vld [vmem:[%s1074_s10 + $0x78] sm:$0xff] }
  0xf4   : > { %656 = vst [vmem:[%s566_s11 + $0x168] sm:$0xff] %v655_v32 }
  0xf5 PF: > { %s13_s16 = sadd.s32 1, %s900_s16   ;;  %s1134_s12 = smov %s888_s13 }
  0xf6   : > { %p10_p12 = scmp.ge.s32.totalorder %s13_s16, 5   ;;  %s1135_s13 = smov %s962_s22 }
  0xf7   : > { %s1136_s14 = smov %s896_s15  ;;  %s1137_s15 = smov %s1139_s17 }
  0xf8   :  { %12 = sbr.rel (!%p10_p12) target bundleno = 3 (0x3), region = 157 }

// kernel: vanilla_attention_forward.4
= control target key start
LH: loop header
LB: loop body
LE: loop exit
PB: predicated region body
PF: predicated region fallthrough
CT: control target
= control target key end

     0   :  { %s2059_s24 = smov 0   ;;  %s2061_s25 = smov 0   ;;  %s2538_s0 = inlined_call_operand.vmem [shape: f32[16,64,16], index: 0, kind: input, shape index: {}]   ;;  %s2539_s1 = inlined_call_operand.vmem [shape: f32[16,64,16], index: 1, kind: input, shape index: {}]   ;;  %s2540_s2 = inlined_call_operand.vmem [shape: f32[16,64,16], index: 2, kind: input, shape index: {}]   ;;  %s2541_s3 = inlined_call_operand.vmem [shape: f32[16,64,1], index: 3, kind: input, shape index: {}, may-alias: {3,5}]   ;;  %s2542_s4 = inlined_call_operand.vmem [shape: f32[16,64,1], index: 4, kind: input, shape index: {}, may-alias: {4,6}]   ;;  %s2543_s5 = inlined_call_operand.vmem [shape: f32[16,64,1], index: 5, kind: input, shape index: {}, may-alias: {3,5}]   ;;  %s2544_s6 = inlined_call_operand.vmem [shape: f32[16,64,1], index: 6, kind: input, shape index: {}, may-alias: {4,6}]   ;;  %s2545_s7 = inlined_call_operand.vmem [shape: f32[16,64,16], index: 7, kind: output, shape index: {}]  }
   0x1   :  { %s2063_s26 = smov 0  }
   0x2 LB: > { %s36_s27 = sadd.s32 1, %s2008_s25  ;;  %p1843_p0 = scmp.ge.s32.totalorder %s2012_s26, 1  ;;  %s2012_s26 = sphi %s2063_s26, %s17_s26   ;;  %s2008_s25 = sphi %s2061_s25, %s2551_s25   ;;  %s2004_s24 = sphi %s2059_s24, %s2550_s24  }
   0x3   : > { %p38_p1 = scmp.ge.s32.totalorder %s36_s27, 16  ;;  %p367_p2 = scmp.lt.s32.totalorder %s2012_s26, 17 }
   0x5   : > { %s2553_s27 = smov (%p38_p1, %s36_s27), 0  ;;  %p368_p3 = pnand %p1843_p0, %p367_p2 }
   0x6   : > { %p462_p4 = scmp.lt.s32.totalorder (!%p368_p3), %s2004_s24, 15  ;;  %s2015_s21 = smov (!%p368_p3), 8  }
   0x7   : > { %371 = sbr.rel (%p368_p3) target bundleno = 997 (0x3e5), region = 48  ;;  %s2016_s22 = smov (!%p368_p3), 120  }
   0xc   : > { %v2014_v0 = vmov 0   ;;  %s2555_s24 = smov (!%p462_p4, %s2004_s24), 15  ;;  %vm775_vm0 = vcmask 64512   ;;  %vm562_vm1 = vcmask 130048   ;;  %vm1122_vm3 = vcmask 523264  }
   0xd   : > { %1941 = vset.pattern.permute.xlu2 %v2014_v0  ;;  %1940 = vset.pattern.permute.xlu1 %v2014_v0  ;;  %s2077_s28 = sshll.u32 %s2555_s24, 6  ;;  %vm545_vm8 = vcmask 7168  }
   0xe   : > { %1939 = vset.pattern.permute.xlu0 %v2014_v0  ;;  %s529_s8 = scalar_lea.vmem %s2544_s6, %s2077_s28  ;;  %s2087_s11 = scalar_lea.vmem %s2542_s4, %s2077_s28 }
   0xf   : > { %v799_v1 = vld [vmem:[%s529_s8 + $0x38] sm:$0xff]  ;;  %v797_v2 = vld [vmem:[%s529_s8 + $0x28] sm:$0xff]  ;;  %v798_v4 = vld [vmem:[%s529_s8 + $0x30] sm:$0xff]  ;;  %s519_s14 = scalar_lea.vmem %s2543_s5, %s2077_s28  ;;  %s2105_s17 = scalar_lea.vmem %s2541_s3, %s2077_s28 }
  0x10   : > { %v795_v3 = vld [vmem:[%s529_s8 + $0x18] sm:$0xff]  ;;  %885 = vperm.xlu0 %1939, %v799_v1   ;;  %875 = vperm.xlu1 %1940, %v797_v2   ;;  %v796_v5 = vld [vmem:[%s529_s8 + $0x20] sm:$0xff]  ;;  %v794_v6 = vld [vmem:[%s529_s8 + $0x10] sm:$0xff]  ;;  %s2113_s20 = scalar_lea.vmem %s2539_s1, %s2077_s28  ;;  %s2166_s29 = scalar_lea.vmem %s2538_s0, %s2077_s28 }
  0x11   : > { %865 = vperm.xlu2 %1941, %v795_v3   ;;  %v793_v7 = vld [vmem:[%s529_s8 + $0x8] sm:$0xff]  ;;  %v792_v8 = vld [vmem:[%s529_s8] sm:$0xff]  ;;  %v602_v9 = vld [vmem:[%s2087_s11 + $0x18] sm:$0xff]  ;;  %s2375_s9 = scalar_lea.vmem %s2540_s2, %s2077_s28  ;;  %s2477_s12 = scalar_lea.vmem %s2545_s7, %s2077_s28 }
  0x12   : > { %v791_v10 = vld [vmem:[%s519_s14 + $0x38] sm:$0xff]  ;;  %v603_v11 = vld [vmem:[%s2087_s11 + $0x20] sm:$0xff]  ;;  %v790_v12 = vld [vmem:[%s519_s14 + $0x30] sm:$0xff] }
  0x13   : > { %v789_v13 = vld [vmem:[%s519_s14 + $0x28] sm:$0xff]  ;;  %v599_v14 = vld [vmem:[%s2087_s11] sm:$0xff]  ;;  %v787_v18 = vld [vmem:[%s519_s14 + $0x18] sm:$0xff] }
  0x14   : > { %v604_v15 = vld [vmem:[%s2087_s11 + $0x28] sm:$0xff]  ;;  %v788_v17 = vld [vmem:[%s519_s14 + $0x20] sm:$0xff]  ;;  %v786_v19 = vld [vmem:[%s519_s14 + $0x10] sm:$0xff] }
  0x15   : > { %v600_v16 = vld [vmem:[%s2087_s11 + $0x8] sm:$0xff]  ;;  %v605_v20 = vld [vmem:[%s2087_s11 + $0x30] sm:$0xff]  ;;  %v606_v22 = vld [vmem:[%s2087_s11 + $0x38] sm:$0xff] }
  0x16   : > { %v601_v21 = vld [vmem:[%s2087_s11 + $0x10] sm:$0xff]  ;;  %v785_v23 = vld [vmem:[%s519_s14 + $0x8] sm:$0xff]  ;;  %v784_v24 = vld [vmem:[%s519_s14] sm:$0xff] }
  0x17   : > { %v594_v25 = vld [vmem:[%s2105_s17 + $0x18] sm:$0xff]  ;;  %v595_v26 = vld [vmem:[%s2105_s17 + $0x20] sm:$0xff]  ;;  %v2122_v31 = vld [vmem:[%s2113_s20 + $0x28] sm:$0xff] }
  0x18   : > { %880 = vperm.xlu0 %1939, %v798_v4   ;;  %870 = vperm.xlu1 %1940, %v796_v5   ;;  %v2116_v27 = vld [vmem:[%s2113_s20 + $0x38] sm:$0xff]  ;;  %v2125_v32 = vld [vmem:[%s2113_s20 + $0x30] sm:$0xff]  ;;  %v2133_v38 = vld [vmem:[%s2113_s20 + $0x20] sm:$0xff] }
  0x19   : > { %860 = vperm.xlu2 %1941, %v794_v6   ;;  %v2139_v40 = vld [vmem:[%s2113_s20 + $0x18] sm:$0xff]  ;;  %v2143_v41 = vld [vmem:[%s2113_s20 + $0x10] sm:$0xff]  ;;  %v2151_v46 = vld [vmem:[%s2113_s20 + $0x8] sm:$0xff] }
  0x1a   : > { %v2158_v49 = vld [vmem:[%s2113_s20] sm:$0xff]  ;;  %v2171_v53 = vld [vmem:[%s2166_s29 + $0x18] sm:$0xff]  ;;  %v596_v55 = vld [vmem:[%s2105_s17 + $0x28] sm:$0xff] }
  0x1b   : > { %v591_v50 = vld [vmem:[%s2105_s17] sm:$0xff]  ;;  %v592_v60 = vld [vmem:[%s2105_s17 + $0x8] sm:$0xff]  ;;  %v597_v0 = vld [vmem:[%s2105_s17 + $0x30] sm:$0xff] }
  0x1c   : > { %v2178_v58 = vld [vmem:[%s2166_s29 + $0x20] sm:$0xff]  ;;  %v2196_v5 = vld [vmem:[%s2166_s29 + $0x28] sm:$0xff]  ;;  %v593_v6 = vld [vmem:[%s2105_s17 + $0x10] sm:$0xff] }
  0x1d   : > { %v2187_v63 = vld [vmem:[%s2166_s29] sm:$0xff] }
  0x20   : > { %855 = vperm.xlu0 %1939, %v793_v7   ;;  %850 = vperm.xlu1 %1940, %v792_v8  }
  0x21   : > { %672 = vperm.xlu2 %1941, %v602_v9  }
  0x28   : > { %837 = vperm.xlu1 %1940, %v791_v10   ;;  %677 = vperm.xlu0 %1939, %v603_v11   ;;  %v2205_v11 = vld [vmem:[%s2166_s29 + $0x8] sm:$0xff] }
  0x29   : > { %832 = vperm.xlu2 %1941, %v790_v12   ;;  %v598_v12 = vld [vmem:[%s2105_s17 + $0x38] sm:$0xff] }
  0x30   : > { %827 = vperm.xlu0 %1939, %v789_v13   ;;  %657 = vperm.xlu1 %1940, %v599_v14  }
  0x31   : > { %682 = vperm.xlu2 %1941, %v604_v15   ;;  %v2212_v15 = vld [vmem:[%s2166_s29 + $0x30] sm:$0xff] }
  0x38   : > { %662 = vperm.xlu0 %1939, %v600_v16   ;;  %822 = vperm.xlu1 %1940, %v788_v17  }
  0x39   : > { %817 = vperm.xlu2 %1941, %v787_v18  }
  0x40   : > { %812 = vperm.xlu0 %1939, %v786_v19   ;;  %687 = vperm.xlu1 %1940, %v605_v20   ;;  %v2220_v20 = vld [vmem:[%s2166_s29 + $0x10] sm:$0xff] }
  0x41   : > { %667 = vperm.xlu2 %1941, %v601_v21  }
  0x48   : > { %692 = vperm.xlu0 %1939, %v606_v22   ;;  %807 = vperm.xlu1 %1940, %v785_v23  }
  0x50   : > { %802 = vperm.xlu1 %1940, %v784_v24   ;;  %v2228_v24 = vld [vmem:[%s2166_s29 + $0x38] sm:$0xff] }
  0x58   : > { %624 = vperm.xlu1 %1940, %v594_v25  }
  0x60   : > { %629 = vperm.xlu1 %1940, %v595_v26  }
  0x6b   : > { %v866_v36 = vpop.permute.xlu2 %865 }
  0x6c   : > { %v891_v42 = vmul.f32 %v866_v36, %v2139_v40 }
  0x73   : > { %v861_v43 = vpop.permute.xlu2 %860 }
  0x74   : > { %v890_v44 = vmul.f32 %v861_v43, %v2143_v41 }
  0x7b   : > { %v673_v52 = vpop.permute.xlu2 %672 }
  0x7c   : > { %v698_v56 = vmul.f32 %v673_v52, %v2171_v53 }
  0x82   : > { %v886_v28 = vpop.permute.xlu0 %885  ;;  %v876_v30 = vpop.permute.xlu1 %875 }
  0x83   : > { %v895_v29 = vmul.f32 %v886_v28, %v2116_v27  ;;  %v893_v33 = vmul.f32 %v876_v30, %v2122_v31  ;;  %v2180_v59 = vpop.permute.xlu2 %832 }
  0x85   : > { %950 = vrot.lane.b32.xlu0 %v895_v29, %s2015_s21  ;;  %918 = vrot.lane.b32.xlu2 %v895_v29, %s2016_s22 }
  0x8a   : > { %v881_v34 = vpop.permute.xlu0 %880  ;;  %v871_v37 = vpop.permute.xlu1 %870 }
  0x8b   : > { %v894_v35 = vmul.f32 %v881_v34, %v2125_v32  ;;  %v892_v39 = vmul.f32 %v871_v37, %v2133_v38  ;;  %v683_v1 = vpop.permute.xlu2 %682 }
  0x8c   : > { %v700_v7 = vmul.f32 %v683_v1, %v2196_v5 }
  0x8d   : > { %948 = vrot.lane.b32.xlu1 %v894_v35, %s2015_s21  ;;  %916 = vrot.lane.b32.xlu0 %v894_v35, %s2016_s22 }
  0x8e   : > { %946 = vrot.lane.b32.xlu2 %v893_v33, %s2015_s21 }
  0x92   : > { %v856_v45 = vpop.permute.xlu0 %855  ;;  %v851_v48 = vpop.permute.xlu1 %850 }
  0x93   : > { %v889_v47 = vmul.f32 %v856_v45, %v2151_v46  ;;  %v888_v51 = vmul.f32 %v851_v48, %v2158_v49  ;;  %v2200_v8 = vpop.permute.xlu2 %817 }
  0x95   : > { %914 = vrot.lane.b32.xlu1 %v893_v33, %s2016_s22  ;;  %944 = vrot.lane.b32.xlu0 %v892_v39, %s2015_s21 }
  0x96   : > { %912 = vrot.lane.b32.xlu2 %v892_v39, %s2016_s22 }
  0x9a   : > { %v838_v54 = vpop.permute.xlu1 %837  ;;  %v678_v57 = vpop.permute.xlu0 %677 }
  0x9b   : > { %v699_v61 = vmul.f32 %v678_v57, %v2178_v58  ;;  %v668_v14 = vpop.permute.xlu2 %667  ;;  %v847_v30 = vmul.f32 %v838_v54, %v2116_v27 }
  0x9c   : > { %v697_v21 = vmul.f32 %v668_v14, %v2220_v20 }
  0x9d   : > { %942 = vrot.lane.b32.xlu1 %v891_v42, %s2015_s21  ;;  %910 = vrot.lane.b32.xlu0 %v891_v42, %s2016_s22  ;;  %v846_v42 = vmul.f32 %v2180_v59, %v2125_v32 }
  0x9e   : > { %940 = vrot.lane.b32.xlu2 %v890_v44, %s2015_s21 }
  0xa2   : > { %v658_v62 = vpop.permute.xlu1 %657  ;;  %v828_v4 = vpop.permute.xlu0 %827 }
  0xa3   : > { %v695_v2 = vmul.f32 %v658_v62, %v2187_v63 }
  0xa5   : > { %908 = vrot.lane.b32.xlu1 %v890_v44, %s2016_s22  ;;  %938 = vrot.lane.b32.xlu0 %v889_v47, %s2015_s21 }
  0xa6   : > { %906 = vrot.lane.b32.xlu2 %v889_v47, %s2016_s22 }
  0xaa   : > { %v2191_v3 = vpop.permute.xlu1 %822  ;;  %v663_v10 = vpop.permute.xlu0 %662 }
  0xab   : > { %v696_v13 = vmul.f32 %v663_v10, %v2205_v11  ;;  %v844_v54 = vmul.f32 %v2191_v3, %v2133_v38 }
  0xad   : > { %609 = vperm.xlu1 %1940, %v591_v50   ;;  %936 = vrot.lane.b32.xlu0 %v888_v51, %s2015_s21  ;;  %v845_v50 = vmul.f32 %v828_v4, %v2122_v31 }
  0xae   : > { %904 = vrot.lane.b32.xlu2 %v888_v51, %s2016_s22 }
  0xb2   : > { %v688_v9 = vpop.permute.xlu1 %687  ;;  %v813_v18 = vpop.permute.xlu0 %812 }
  0xb3   : > { %v701_v17 = vmul.f32 %v688_v9, %v2212_v15  ;;  %v842_v3 = vmul.f32 %v813_v18, %v2143_v41 }
  0xb5   : > { %634 = vperm.xlu1 %1940, %v596_v55   ;;  %749 = vrot.lane.b32.xlu0 %v698_v56, %s2015_s21 }
  0xb6   : > { %717 = vrot.lane.b32.xlu2 %v698_v56, %s2016_s22 }
  0xba   : > { %v2214_v16 = vpop.permute.xlu1 %807  ;;  %v693_v23 = vpop.permute.xlu0 %692 }
  0xbb   : > { %v702_v26 = vmul.f32 %v693_v23, %v2228_v24 }
  0xbd   : > { %614 = vperm.xlu1 %1940, %v592_v60   ;;  %751 = vrot.lane.b32.xlu0 %v699_v61, %s2015_s21  ;;  %v843_v60 = vmul.f32 %v2200_v8, %v2139_v40 }
  0xbe   : > { %719 = vrot.lane.b32.xlu2 %v699_v61, %s2016_s22 }
  0xc2   : > { %v2223_v22 = vpop.permute.xlu1 %802 }
  0xc3   : > { %v840_v14 = vmul.f32 %v2223_v22, %v2158_v49 }
  0xc5   : > { %639 = vperm.xlu1 %1940, %v597_v0   ;;  %743 = vrot.lane.b32.xlu0 %v695_v2, %s2015_s21 }
  0xc6   : > { %711 = vrot.lane.b32.xlu2 %v695_v2, %s2016_s22 }
  0xca   : > { %v2231_v28 = vpop.permute.xlu1 %624 }
  0xcd   : > { %619 = vperm.xlu1 %1940, %v593_v6   ;;  %753 = vrot.lane.b32.xlu0 %v700_v7, %s2015_s21  ;;  %v841_v6 = vmul.f32 %v2214_v16, %v2151_v46 }
  0xce   : > { %721 = vrot.lane.b32.xlu2 %v700_v7, %s2016_s22 }
  0xd2   : > { %v2236_v33 = vpop.permute.xlu1 %629 }
  0xd5   : > { %644 = vperm.xlu1 %1940, %v598_v12   ;;  %745 = vrot.lane.b32.xlu0 %v696_v13, %s2015_s21 }
  0xd6   : > { %713 = vrot.lane.b32.xlu2 %v696_v13, %s2016_s22 }
  0xdd   : > { %755 = vrot.lane.b32.xlu0 %v701_v17, %s2015_s21 }
  0xde   : > { %723 = vrot.lane.b32.xlu2 %v701_v17, %s2016_s22 }
  0xdf   : > { %v919_v19 = vpop.permute.xlu2 %918 }
  0xe0   : > { %v935_v35 = vsub.f32 %v847_v30, %v919_v19 }
  0xe5   : > { %747 = vrot.lane.b32.xlu0 %v697_v21, %s2015_s21 }
  0xe6   : > { %715 = vrot.lane.b32.xlu2 %v697_v21, %s2016_s22  ;;  %v650_v21 = vmul.f32 %v2231_v28, %v2171_v53 }
  0xe8   : > { %v947_v25 = vpop.permute.xlu2 %946 }
  0xe9   : > { %v965_v55 = vadd.f32 %v947_v25, %v845_v50 }
  0xed   : > { %757 = vrot.lane.b32.xlu0 %v702_v26, %s2015_s21 }
  0xee   : > { %725 = vrot.lane.b32.xlu2 %v702_v26, %s2016_s22 }
  0xf0   : > { %v913_v29 = vpop.permute.xlu2 %912 }
  0xf1   : > { %v932_v59 = vsub.f32 %v844_v54, %v913_v29 }
  0xf7   : > { %v951_v34 = vpop.permute.xlu0 %950 }
  0xf8   : > { %v967_v36 = vadd.f32 %v951_v34, %v847_v30  ;;  %v941_v37 = vpop.permute.xlu2 %940  ;;  %v651_v30 = vmul.f32 %v2236_v33, %v2178_v58 }
  0xf9   : > { %v962_v7 = vadd.f32 %v941_v37, %v842_v3 }
  0xfa   : > { %v975_v39 = vsel %vm775_vm0, %v935_v35, %v967_v36 }
  0xfb   : > { %1860 = vmatpush.xpose.msk.msra.mxu0 %vm562_vm1, %v975_v39  ;;  %1894 = vmatpush.xpose.msk.msra.mxu2 %vm562_vm1, %v975_v39 }
  0xff   : > { %v949_v43 = vpop.permute.xlu1 %948  ;;  %v917_v44 = vpop.permute.xlu0 %916 }
 0x100   : > { %v966_v27 = vadd.f32 %v949_v43, %v846_v42  ;;  %v934_v45 = vsub.f32 %v846_v42, %v917_v44  ;;  %v907_v48 = vpop.permute.xlu2 %906 }
 0x101   : > { %v929_v13 = vsub.f32 %v841_v6, %v907_v48 }
 0x102   : > { %v974_v47 = vsel %vm775_vm0, %v934_v45, %v966_v27 }
 0x103   : > { %1861 = vmatpush.xpose.msk.msra.mxu0 %vm562_vm1, %v974_v47  ;;  %1895 = vmatpush.xpose.msk.msra.mxu2 %vm562_vm1, %v974_v47 }
 0x107   : > { %v915_v51 = vpop.permute.xlu1 %914  ;;  %v945_v52 = vpop.permute.xlu0 %944 }
 0x108   : > { %v933_v32 = vsub.f32 %v845_v50, %v915_v51  ;;  %v964_v56 = vadd.f32 %v945_v52, %v844_v54  ;;  %v905_v61 = vpop.permute.xlu2 %904 }
 0x109   : > { %v928_v16 = vsub.f32 %v840_v14, %v905_v61 }
 0x10a   : > { %v973_v57 = vsel %vm775_vm0, %v933_v32, %v965_v55  ;;  %v972_v31 = vsel %vm775_vm0, %v932_v59, %v964_v56 }
 0x10b   : > { %1862 = vmatpush.xpose.msk.msra.mxu0 %vm562_vm1, %v973_v57  ;;  %1896 = vmatpush.xpose.msk.msra.mxu2 %vm562_vm1, %v973_v57 }
 0x10f   : > { %1863 = vmatpush.xpose.msk.msra.mxu0 %vm562_vm1, %v972_v31  ;;  %1897 = vmatpush.xpose.msk.msra.mxu2 %vm562_vm1, %v972_v31  ;;  %v943_v38 = vpop.permute.xlu1 %942  ;;  %v911_v62 = vpop.permute.xlu0 %910 }
 0x110   : > { %v963_v0 = vadd.f32 %v943_v38, %v843_v60  ;;  %v931_v1 = vsub.f32 %v843_v60, %v911_v62  ;;  %v718_v9 = vpop.permute.xlu2 %717 }
 0x111   : > { %v738_v23 = vsub.f32 %v650_v21, %v718_v9 }
 0x112   : > { %v971_v2 = vsel %vm775_vm0, %v931_v1, %v963_v0 }
 0x113   : > { %1864 = vmatpush.xpose.msk.msra.mxu0 %vm562_vm1, %v971_v2  ;;  %1898 = vmatpush.xpose.msk.msra.mxu2 %vm562_vm1, %v971_v2 }
 0x117   : > { %v909_v40 = vpop.permute.xlu1 %908  ;;  %v939_v4 = vpop.permute.xlu0 %938 }
 0x118   : > { %v930_v8 = vsub.f32 %v842_v3, %v909_v40  ;;  %v961_v10 = vadd.f32 %v939_v4, %v841_v6  ;;  %v720_v19 = vpop.permute.xlu2 %719 }
 0x119   : > { %v739_v35 = vsub.f32 %v651_v30, %v720_v19 }
 0x11a   : > { %v970_v12 = vsel %vm775_vm0, %v930_v8, %v962_v7  ;;  %v969_v41 = vsel %vm775_vm0, %v929_v13, %v961_v10 }
 0x11b   : > { %1865 = vmatpush.xpose.msk.msra.mxu0 %vm562_vm1, %v970_v12  ;;  %1899 = vmatpush.xpose.msk.msra.mxu2 %vm562_vm1, %v970_v12 }
 0x11f   : > { %1866 = vmatpush.xpose.msk.msra.mxu0 %vm562_vm1, %v969_v41  ;;  %1900 = vmatpush.xpose.msk.msra.mxu2 %vm562_vm1, %v969_v41  ;;  %v937_v46 = vpop.permute.xlu0 %936  ;;  %v610_v49 = vpop.permute.xlu1 %609 }
 0x120   : > { %v960_v17 = vadd.f32 %v937_v46, %v840_v14  ;;  %v712_v29 = vpop.permute.xlu2 %711  ;;  %v647_v53 = vmul.f32 %v610_v49, %v2187_v63 }
 0x122   : > { %v968_v18 = vsel %vm775_vm0, %v928_v16, %v960_v17  ;;  %v735_v43 = vsub.f32 %v647_v53, %v712_v29 }
 0x123   : > { %1867 = vmatpush.xpose.msk.msra.mxu0 %vm562_vm1, %v968_v18  ;;  %1901 = vmatpush.xpose.msk.msra.mxu2 %vm562_vm1, %v968_v18 }
 0x127   : > { %v750_v22 = vpop.permute.xlu0 %749  ;;  %v635_v37 = vpop.permute.xlu1 %634 }
 0x128   : > { %v770_v25 = vadd.f32 %v750_v22, %v650_v21  ;;  %v722_v28 = vpop.permute.xlu2 %721  ;;  %v652_v58 = vmul.f32 %v635_v37, %v2196_v5 }
 0x12a   : > { %v779_v26 = vsel %vm775_vm0, %v738_v23, %v770_v25  ;;  %v740_v47 = vsub.f32 %v652_v58, %v722_v28 }
 0x12b   : > { %1871 = vmatmul.msk.f32.vlgmr.msra.gmra.mxu2 %vm562_vm1, %v779_v26 }
 0x12f   : > { %v752_v34 = vpop.permute.xlu0 %751  ;;  %v615_v45 = vpop.permute.xlu1 %614 }
 0x130   : > { %v771_v36 = vadd.f32 %v752_v34, %v651_v30  ;;  %v714_v50 = vpop.permute.xlu2 %713  ;;  %v648_v63 = vmul.f32 %v615_v45, %v2205_v11 }
 0x132   : > { %v780_v39 = vsel %vm775_vm0, %v739_v35, %v771_v36  ;;  %v736_v55 = vsub.f32 %v648_v63, %v714_v50 }
 0x133   : > { %1872 = vmatmul.msk.f32.gmra.mxu2 %vm562_vm1, %v780_v39 }
 0x137   : > { %v744_v42 = vpop.permute.xlu0 %743  ;;  %v640_v52 = vpop.permute.xlu1 %639 }
 0x138   : > { %v767_v44 = vadd.f32 %v744_v42, %v647_v53  ;;  %v724_v57 = vpop.permute.xlu2 %723  ;;  %v653_v5 = vmul.f32 %v640_v52, %v2212_v15  ;;  %v2017_v42 = vmov -inf  }
 0x139   : > { %549 = vst.msk [vmem:[#allocation2 + $0x18] sm:$0xff] %vm545_vm8, %v2017_v42 }
 0x13a   : > { %v776_v27 = vsel %vm775_vm0, %v735_v43, %v767_v44  ;;  %v741_v61 = vsub.f32 %v653_v5, %v724_v57  ;;  %546 = vst.msk [vmem:[#allocation2] sm:$0xff] %vm545_vm8, %v2017_v42 }
 0x13b   : > { %1868 = vmatmul.msk.f32.vlgmr.msra.gmra.mxu0 %vm562_vm1, %v776_v27  ;;  %547 = vst.msk [vmem:[#allocation2 + $0x8] sm:$0xff] %vm545_vm8, %v2017_v42 }
 0x13c   : > { %548 = vst.msk [vmem:[#allocation2 + $0x10] sm:$0xff] %vm545_vm8, %v2017_v42 }
 0x13d   : > { %550 = vst.msk [vmem:[#allocation2 + $0x20] sm:$0xff] %vm545_vm8, %v2017_v42 }
 0x13e   : > { %551 = vst.msk [vmem:[#allocation2 + $0x28] sm:$0xff] %vm545_vm8, %v2017_v42 }
 0x13f   : > { %v754_v33 = vpop.permute.xlu0 %753  ;;  %v620_v59 = vpop.permute.xlu1 %619  ;;  %552 = vst.msk [vmem:[#allocation2 + $0x30] sm:$0xff] %vm545_vm8, %v2017_v42 }
 0x140   : > { %v772_v48 = vadd.f32 %v754_v33, %v652_v58  ;;  %v649_v11 = vmul.f32 %v620_v59, %v2220_v20  ;;  %v716_v62 = vpop.permute.xlu2 %715  ;;  %v1075_v20 = vlaneseq  ;;  %553 = vst.msk [vmem:[#allocation2 + $0x38] sm:$0xff] %vm545_vm8, %v2017_v42  ;;  %v1117_v57 = vld [vmem:[#allocation2 + $0x18] sm:$0xff] }
 0x142   : > { %v781_v51 = vsel %vm775_vm0, %v740_v47, %v772_v48  ;;  %v737_v1 = vsub.f32 %v649_v11, %v716_v62  ;;  %v1076_v10 = vshrl.u32 %v1075_v20, 7  ;;  %v2300_v13 = vand.u32 127, %v1075_v20 }
 0x143   : > { %1873 = vmatmul.msk.f32.gmra.mxu2 %vm562_vm1, %v781_v51 }
 0x144   : > { %v1079_v12 = vadd.s32 24, %v1076_v10  ;;  %vm1098_vm4 = vcmp.ge.s32.totalorder %v1076_v10, %v2300_v13  ;;  %v1080_v19 = vadd.s32 32, %v1076_v10  ;;  %v1081_v25 = vadd.s32 40, %v1076_v10 }
 0x145   : > { %v1077_v29 = vadd.s32 8, %v1076_v10  ;;  %v1082_v43 = vadd.s32 48, %v1076_v10  ;;  %v1078_v44 = vadd.s32 16, %v1076_v10 }
 0x146   : > { %vm1101_vm2 = vcmp.ge.s32.totalorder %v1079_v12, %v2300_v13  ;;  %vm1102_vm5 = vcmp.ge.s32.totalorder %v1080_v19, %v2300_v13  ;;  %vm1103_vm6 = vcmp.ge.s32.totalorder %v1081_v25, %v2300_v13 }
 0x147   : > { %v746_v54 = vpop.permute.xlu0 %745  ;;  %v645_v3 = vpop.permute.xlu1 %644  ;;  %vm1099_vm7 = vcmp.ge.s32.totalorder %v1077_v29, %v2300_v13  ;;  %vm1104_vm9 = vcmp.ge.s32.totalorder %v1082_v43, %v2300_v13  ;;  %vm1100_vm10 = vcmp.ge.s32.totalorder %v1078_v44, %v2300_v13  ;;  %v2387_v25 = vld [vmem:[#allocation2 + $0x38] sm:$0xff] }
 0x148   : > { %v768_v32 = vadd.f32 %v746_v54, %v648_v63  ;;  %v654_v15 = vmul.f32 %v645_v3, %v2228_v24  ;;  %v726_v4 = vpop.permute.xlu2 %725  ;;  %v1083_v63 = vadd.s32 56, %v1076_v10  ;;  %v1116_v10 = vld [vmem:[#allocation2 + $0x10] sm:$0xff] }
 0x14a   : > { %v777_v56 = vsel %vm775_vm0, %v736_v55, %v768_v32  ;;  %v742_v7 = vsub.f32 %v654_v15, %v726_v4  ;;  %vm1105_vm11 = vcmp.ge.s32.totalorder %v1083_v63, %v2300_v13  ;;  %v1358_v63 = vld [vmem:[%s2375_s9 + $0x10] sm:$0xff] }
 0x14b   : > { %1869 = vmatmul.msk.f32.gmra.mxu0 %vm562_vm1, %v777_v56  ;;  %v2018_v56 = vmov 0.0  }
 0x14c   : > { %563 = vst.msk [vmem:[#allocation4] sm:$0xff] %vm562_vm1, %v2018_v56 }
 0x14d   : > { %554 = vst.msk [vmem:[#allocation3] sm:$0xff] %vm545_vm8, %v2018_v56 }
 0x14e   : > { %555 = vst.msk [vmem:[#allocation3 + $0x8] sm:$0xff] %vm545_vm8, %v2018_v56 }
 0x14f   : > { %v756_v60 = vpop.permute.xlu0 %755  ;;  %556 = vst.msk [vmem:[#allocation3 + $0x10] sm:$0xff] %vm545_vm8, %v2018_v56 }
 0x150   : > { %v773_v31 = vadd.f32 %v756_v60, %v653_v5  ;;  %557 = vst.msk [vmem:[#allocation3 + $0x18] sm:$0xff] %vm545_vm8, %v2018_v56  ;;  %v1114_v60 = vld [vmem:[#allocation2] sm:$0xff] }
 0x151   : > { %558 = vst.msk [vmem:[#allocation3 + $0x20] sm:$0xff] %vm545_vm8, %v2018_v56 }
 0x152   : > { %v782_v38 = vsel %vm775_vm0, %v741_v61, %v773_v31  ;;  %559 = vst.msk [vmem:[#allocation3 + $0x28] sm:$0xff] %vm545_vm8, %v2018_v56 }
 0x153   : > { %1874 = vmatmul.msk.f32.gmra.mxu2 %vm562_vm1, %v782_v38  ;;  %560 = vst.msk [vmem:[#allocation3 + $0x30] sm:$0xff] %vm545_vm8, %v2018_v56  ;;  %v1118_v38 = vld [vmem:[#allocation2 + $0x20] sm:$0xff] }
 0x154   : > { %561 = vst.msk [vmem:[#allocation3 + $0x38] sm:$0xff] %vm545_vm8, %v2018_v56 }
 0x155   : > { %564 = vst.msk [vmem:[#allocation4 + $0x8] sm:$0xff] %vm562_vm1, %v2018_v56 }
 0x156   : > { %565 = vst.msk [vmem:[#allocation4 + $0x10] sm:$0xff] %vm562_vm1, %v2018_v56 }
 0x157   : > { %v748_v0 = vpop.permute.xlu0 %747  ;;  %566 = vst.msk [vmem:[#allocation4 + $0x18] sm:$0xff] %vm562_vm1, %v2018_v56 }
 0x158   : > { %v769_v2 = vadd.f32 %v748_v0, %v649_v11  ;;  %567 = vst.msk [vmem:[#allocation4 + $0x20] sm:$0xff] %vm562_vm1, %v2018_v56  ;;  %v1119_v0 = vld [vmem:[#allocation2 + $0x28] sm:$0xff] }
 0x159   : > { %568 = vst.msk [vmem:[#allocation4 + $0x28] sm:$0xff] %vm562_vm1, %v2018_v56 }
 0x15a   : > { %v778_v40 = vsel %vm775_vm0, %v737_v1, %v769_v2  ;;  %569 = vst.msk [vmem:[#allocation4 + $0x30] sm:$0xff] %vm562_vm1, %v2018_v56  ;;  %v1115_v2 = vld [vmem:[#allocation2 + $0x8] sm:$0xff] }
 0x15b   : > { %1870 = vmatmul.msk.f32.gmra.mxu0 %vm562_vm1, %v778_v40  ;;  %570 = vst.msk [vmem:[#allocation4 + $0x38] sm:$0xff] %vm562_vm1, %v2018_v56 }
 0x15f   : > { %v758_v6 = vpop.permute.xlu0 %757 }
 0x160   : > { %v774_v8 = vadd.f32 %v758_v6, %v654_v15 }
 0x162   : > { %v783_v9 = vsel %vm775_vm0, %v742_v7, %v774_v8  ;;  %v1120_v8 = vld [vmem:[#allocation2 + $0x30] sm:$0xff] }
 0x163   : > { %1875 = vmatmul.msk.f32.gmra.mxu2 %vm562_vm1, %v783_v9 }
 0x1ae   : > { %v1051_v14 = vpop.f32.mrf.mxu2 }
 0x1af   : > { %v1069_v41 = vmul.f32 0.25, %v1051_v14 }
 0x1b1   : > { %v2303_v46 = vsel %vm1101_vm2, %v1069_v41, -inf }
 0x1b2   : > { %v1132_v24 = vsel %vm1122_vm3, %v2303_v46, -inf }
 0x1b3   : > { %1133 = vmax.xlane.f32.xlu2 %v1132_v24  ;;  %v1363_v24 = vld [vmem:[%s2375_s9 + $0x38] sm:$0xff] }
 0x1b4   : > { %1396 = vmatpush.msra.mxu1 %v1363_v24  ;;  %1902 = vmatpush.msra.mxu3 %v1363_v24 }
 0x1b6   : > { %v1054_v18 = vpop.f32.mrf.mxu2 }
 0x1b7   : > { %v1070_v22 = vmul.f32 0.25, %v1054_v18 }
 0x1b8   : > { %v1042_v16 = vpop.f32.mrf.mxu0 }
 0x1b9   : > { %v1066_v17 = vmul.f32 0.25, %v1042_v16  ;;  %v2313_v23 = vsel %vm1102_vm5, %v1070_v22, -inf  ;;  %v1362_v16 = vld [vmem:[%s2375_s9 + $0x30] sm:$0xff] }
 0x1ba   : > { %v1135_v26 = vsel %vm1122_vm3, %v2313_v23, -inf  ;;  %1397 = vmatpush.msra.mxu1 %v1362_v16  ;;  %1903 = vmatpush.msra.mxu3 %v1362_v16 }
 0x1bb   : > { %v2308_v21 = vsel %vm1098_vm4, %v1066_v17, -inf }
 0x1bc   : > { %v1123_v49 = vsel %vm1122_vm3, %v2308_v21, -inf }
 0x1bd   : > { %1124 = vmax.xlane.f32.xlu1 %v1123_v49 }
 0x1c5   : > { %1136 = vmax.xlane.f32.xlu1 %v1135_v26 }
 0x1c6   : > { %v1057_v30 = vpop.f32.mrf.mxu2 }
 0x1c7   : > { %v1071_v34 = vmul.f32 0.25, %v1057_v30 }
 0x1c8   : > { %v1045_v35 = vpop.f32.mrf.mxu0 }
 0x1c9   : > { %v1067_v36 = vmul.f32 0.25, %v1045_v35  ;;  %v2319_v37 = vsel %vm1103_vm6, %v1071_v34, -inf }
 0x1ca   : > { %v1138_v39 = vsel %vm1122_vm3, %v2319_v37, -inf }
 0x1cb   : > { %1139 = vmax.xlane.f32.xlu0 %v1138_v39  ;;  %v2323_v53 = vsel %vm1099_vm7, %v1067_v36, -inf }
 0x1cc   : > { %v1126_v28 = vsel %vm1122_vm3, %v2323_v53, -inf }
 0x1cd   : > { %1127 = vmax.xlane.f32.xlu2 %v1126_v28 }
 0x1d6   : > { %v1060_v27 = vpop.f32.mrf.mxu2 }
 0x1d7   : > { %v1072_v45 = vmul.f32 0.25, %v1060_v27 }
 0x1d8   : > { %v1048_v58 = vpop.f32.mrf.mxu0 }
 0x1d9   : > { %v1068_v33 = vmul.f32 0.25, %v1048_v58  ;;  %v2337_v47 = vsel %vm1104_vm9, %v1072_v45, -inf  ;;  %v1361_v45 = vld [vmem:[%s2375_s9 + $0x28] sm:$0xff] }
 0x1da   : > { %v1141_v48 = vsel %vm1122_vm3, %v2337_v47, -inf  ;;  %1398 = vmatpush.msra.mxu1 %v1361_v45  ;;  %1904 = vmatpush.msra.mxu3 %v1361_v45 }
 0x1db   : > { %1142 = vmax.xlane.f32.xlu1 %v1141_v48  ;;  %v2341_v50 = vsel %vm1100_vm10, %v1068_v33, -inf  ;;  %v1360_v48 = vld [vmem:[%s2375_s9 + $0x20] sm:$0xff] }
 0x1dc   : > { %v1129_v51 = vsel %vm1122_vm3, %v2341_v50, -inf  ;;  %1399 = vmatpush.msra.mxu1 %v1360_v48  ;;  %1905 = vmatpush.msra.mxu3 %v1360_v48 }
 0x1dd   : > { %1130 = vmax.xlane.f32.xlu2 %v1129_v51  ;;  %v1359_v51 = vld [vmem:[%s2375_s9 + $0x18] sm:$0xff] }
 0x1de   : > { %1400 = vmatpush.msra.mxu1 %v1359_v51  ;;  %1906 = vmatpush.msra.mxu3 %v1359_v51 }
 0x1e0   : > { %1401 = vmatpush.msra.mxu1 %v1358_v63  ;;  %1907 = vmatpush.msra.mxu3 %v1358_v63 }
 0x1e6   : > { %v1063_v52 = vpop.f32.mrf.mxu2 }
 0x1e7   : > { %v1073_v54 = vmul.f32 0.25, %v1063_v52  ;;  %v1357_v52 = vld [vmem:[%s2375_s9 + $0x8] sm:$0xff] }
 0x1e8   : > { %1402 = vmatpush.msra.mxu1 %v1357_v52  ;;  %1908 = vmatpush.msra.mxu3 %v1357_v52 }
 0x1e9   : > { %v2346_v55 = vsel %vm1105_vm11, %v1073_v54, -inf  ;;  %v1356_v54 = vld [vmem:[%s2375_s9] sm:$0xff] }
 0x1ea   : > { %v1144_v32 = vsel %vm1122_vm3, %v2346_v55, -inf  ;;  %1403 = vmatpush.msra.mxu1 %v1356_v54  ;;  %1909 = vmatpush.msra.mxu3 %v1356_v54 }
 0x1eb   : > { %1145 = vmax.xlane.f32.xlu0 %v1144_v32 }
 0x226   : > { %v1134_v5 = vpop.xlane.xlu2 %1133 }
 0x227   : > { %v1150_v59 = vmax.f32 %v1117_v57, %v1134_v5 }
 0x229   : > { %1448 = vst.msk [vmem:[#allocation2 + $0x18] sm:$0xff] %vm545_vm8, %v1150_v59  ;;  %v1158_v49 = vsub.f32 %v1117_v57, %v1150_v59 }
 0x22b   : > { %v1169_v26 = vmul.f32 1.442695, %v1158_v49 }
 0x230   : > { %v1125_v61 = vpop.xlane.xlu1 %1124 }
 0x231   : > { %v1147_v31 = vmax.f32 %v1114_v60, %v1125_v61 }
 0x233   : > { %1445 = vst.msk [vmem:[#allocation2] sm:$0xff] %vm545_vm8, %v1147_v31  ;;  %1181 = vperm.xlu2 %1941, %v1147_v31   ;;  %v1155_v17 = vsub.f32 %v1114_v60, %v1147_v31 }
 0x235   : > { %v1163_v18 = vmul.f32 1.442695, %v1155_v17 }
 0x238   : > { %v1137_v11 = vpop.xlane.xlu1 %1136 }
 0x239   : > { %v1151_v62 = vmax.f32 %v1118_v38, %v1137_v11 }
 0x23b   : > { %1449 = vst.msk [vmem:[#allocation2 + $0x20] sm:$0xff] %vm545_vm8, %v1151_v62  ;;  %v1159_v36 = vsub.f32 %v1118_v38, %v1151_v62 }
 0x23d   : > { %v1171_v42 = vmul.f32 1.442695, %v1159_v36 }
 0x23e   : > { %v1140_v1 = vpop.xlane.xlu0 %1139 }
 0x23f   : > { %v1152_v3 = vmax.f32 %v1119_v0, %v1140_v1 }
 0x240   : > { %v1128_v40 = vpop.xlane.xlu2 %1127 }
 0x241   : > { %1450 = vst.msk [vmem:[#allocation2 + $0x28] sm:$0xff] %vm545_vm8, %v1152_v3  ;;  %v1148_v15 = vmax.f32 %v1115_v2, %v1128_v40  ;;  %1206 = vperm.xlu1 %1940, %v1152_v3   ;;  %v1160_v7 = vsub.f32 %v1119_v0, %v1152_v3 }
 0x243   : > { %v1156_v4 = vsub.f32 %v1115_v2, %v1148_v15  ;;  %1446 = vst.msk [vmem:[#allocation2 + $0x8] sm:$0xff] %vm545_vm8, %v1148_v15  ;;  %1186 = vperm.xlu0 %1939, %v1148_v15   ;;  %v1173_v9 = vmul.f32 1.442695, %v1160_v7 }
 0x245   : > { %v1165_v6 = vmul.f32 1.442695, %v1156_v4 }
 0x247   : > { %1942 = vpow2.f32 %v1165_v6 }
 0x248   : > { %1944 = vpow2.f32 %v1173_v9 }
 0x249   : > { %1196 = vperm.xlu1 %1940, %v1150_v59   ;;  %1946 = vpow2.f32 %v1163_v18 }
 0x24a   : > { %1948 = vpow2.f32 %v1169_v26 }
 0x24d   : > { %v2377_v13 = vpop.eup %1942 }
 0x24e   : > { %v1143_v20 = vpop.xlane.xlu1 %1142  ;;  %v2384_v19 = vpop.eup %1944 }
 0x24f   : > { %v1153_v12 = vmax.f32 %v1120_v8, %v1143_v20  ;;  %v2392_v35 = vpop.eup %1946 }
 0x250   : > { %v1131_v14 = vpop.xlane.xlu2 %1130  ;;  %v2400_v44 = vpop.eup %1948 }
 0x251   : > { %1451 = vst.msk [vmem:[#allocation2 + $0x30] sm:$0xff] %vm545_vm8, %v1153_v12  ;;  %v1149_v41 = vmax.f32 %v1116_v10, %v1131_v14  ;;  %1315 = vperm.xlu1 %1940, %v2377_v13   ;;  %1211 = vperm.xlu2 %1941, %v1153_v12   ;;  %v1161_v28 = vsub.f32 %v1120_v8, %v1153_v12 }
 0x253   : > { %1447 = vst.msk [vmem:[#allocation2 + $0x10] sm:$0xff] %vm545_vm8, %v1149_v41  ;;  %1191 = vperm.xlu0 %1939, %v1149_v41   ;;  %v1157_v22 = vsub.f32 %v1116_v10, %v1149_v41  ;;  %v1175_v43 = vmul.f32 1.442695, %v1161_v28 }
 0x255   : > { %v1167_v29 = vmul.f32 1.442695, %v1157_v22 }
 0x257   : > { %1950 = vpow2.f32 %v1167_v29 }
 0x258   : > { %1952 = vpow2.f32 %v1171_v42  ;;  %v1300_v42 = vld [vmem:[#allocation4] sm:$0xff] }
 0x259   : > { %1335 = vperm.xlu1 %1940, %v2384_v19   ;;  %1201 = vperm.xlu2 %1941, %v1151_v62   ;;  %1954 = vpow2.f32 %v1175_v43 }
 0x25d   : > { %v2402_v27 = vpop.eup %1950 }
 0x25e   : > { %v1146_v30 = vpop.xlane.xlu0 %1145  ;;  %v2407_v58 = vpop.eup %1952 }
 0x25f   : > { %v2390_v34 = vmax.f32 %v2387_v25, %v1146_v30  ;;  %v2409_v33 = vpop.eup %1954  ;;  %v1243_v30 = vld [vmem:[#allocation3] sm:$0xff] }
 0x261   : > { %v1162_v39 = vsub.f32 %v2387_v25, %v2390_v34  ;;  %1452 = vst.msk [vmem:[#allocation2 + $0x38] sm:$0xff] %vm545_vm8, %v2390_v34  ;;  %1310 = vperm.xlu2 %1941, %v2392_v35   ;;  %1216 = vperm.xlu0 %1939, %v2390_v34  }
 0x269   : > { %1325 = vperm.xlu2 %1941, %v2400_v44   ;;  %1320 = vperm.xlu0 %1939, %v2402_v27  }
 0x271   : > { %1340 = vperm.xlu2 %1941, %v2409_v33   ;;  %1330 = vperm.xlu0 %1939, %v2407_v58  }
 0x28d   : > { %v1182_v32 = vpop.permute.xlu2 %1181 }
 0x28e   : > { %v1219_v56 = vsub.f32 %v2308_v21, %v1182_v32  ;;  %v1244_v32 = vld [vmem:[#allocation3 + $0x8] sm:$0xff] }
 0x290   : > { %v1227_v57 = vmul.f32 1.442695, %v1219_v56 }
 0x292   : > { %1956 = vpow2.f32 %v1227_v57 }
 0x298   : > { %v1957_v5 = vpop.eup %1956 }
 0x299   : > { %1876 = vmatmul.msk.f32.vlgmr.msra.gmra.mxu1 %vm1122_vm3, %v1957_v5  ;;  %v1259_v59 = vsel %vm1122_vm3, %v1957_v5, 0.0 }
 0x29a   : > { %1260 = vadd.xlane.f32.xlu1 %v1259_v59  ;;  %v1246_v59 = vld [vmem:[#allocation3 + $0x18] sm:$0xff] }
 0x2ab   : > { %v1212_v60 = vpop.permute.xlu2 %1211 }
 0x2ac   : > { %v1225_v62 = vsub.f32 %v2337_v47, %v1212_v60  ;;  %v1247_v60 = vld [vmem:[#allocation3 + $0x20] sm:$0xff] }
 0x2ae   : > { %v1239_v3 = vmul.f32 1.442695, %v1225_v62  ;;  %v1255_v62 = vmul.f32 %v2407_v58, %v1247_v60 }
 0x2b3   : > { %v1207_v61 = vpop.permute.xlu1 %1206  ;;  %v1202_v38 = vpop.permute.xlu2 %1201 }
 0x2b4   : > { %v1224_v31 = vsub.f32 %v2319_v37, %v1207_v61  ;;  %v1223_v21 = vsub.f32 %v2313_v23, %v1202_v38  ;;  %v1301_v61 = vld [vmem:[#allocation4 + $0x8] sm:$0xff] }
 0x2b5   : > { %v1187_v11 = vpop.permute.xlu0 %1186 }
 0x2b6   : > { %v1237_v0 = vmul.f32 1.442695, %v1224_v31  ;;  %v1220_v1 = vsub.f32 %v2323_v53, %v1187_v11  ;;  %v1235_v40 = vmul.f32 1.442695, %v1223_v21  ;;  %v1254_v31 = vmul.f32 %v2400_v44, %v1246_v59  ;;  %v1245_v44 = vld [vmem:[#allocation3 + $0x10] sm:$0xff] }
 0x2b8   : > { %1958 = vpow2.f32 %v1237_v0  ;;  %v1229_v2 = vmul.f32 1.442695, %v1220_v1 }
 0x2ba   : > { %1960 = vpow2.f32 %v1229_v2  ;;  %v1305_v2 = vld [vmem:[#allocation4 + $0x28] sm:$0xff] }
 0x2bb   : > { %v1197_v15 = vpop.permute.xlu1 %1196  ;;  %1962 = vpow2.f32 %v1239_v3  ;;  %v1311_v43 = vpop.permute.xlu2 %1310 }
 0x2bc   : > { %v1222_v4 = vsub.f32 %v2303_v46, %v1197_v15  ;;  %1964 = vpow2.f32 %v1235_v40  ;;  %v1348_v45 = vmul.f32 %v1311_v43, %v1300_v42 }
 0x2be   : > { %v1959_v6 = vpop.eup %1958  ;;  %v1233_v37 = vmul.f32 1.442695, %v1222_v4  ;;  %v1249_v4 = vld [vmem:[#allocation3 + $0x30] sm:$0xff] }
 0x2bf   : > { %1881 = vmatmul.msk.f32.vlgmr.msra.gmra.mxu3 %vm1122_vm3, %v1959_v6  ;;  %v1274_v18 = vsel %vm1122_vm3, %v1959_v6, 0.0  ;;  %v1257_v58 = vmul.f32 %v2409_v33, %v1249_v4 }
 0x2c0   : > { %v1961_v47 = vpop.eup %1960  ;;  %1966 = vpow2.f32 %v1233_v37 }
 0x2c1   : > { %1877 = vmatmul.msk.f32.gmra.mxu1 %vm1122_vm3, %v1961_v47  ;;  %v1262_v23 = vsel %vm1122_vm3, %v1961_v47, 0.0  ;;  %v1963_v53 = vpop.eup %1962 }
 0x2c2   : > { %1263 = vadd.xlane.f32.xlu0 %v1262_v23  ;;  %v1965_v7 = vpop.eup %1964  ;;  %v1277_v14 = vsel %vm1122_vm3, %v1963_v53, 0.0 }
 0x2c3   : > { %v1271_v12 = vsel %vm1122_vm3, %v1965_v7, 0.0  ;;  %v1316_v26 = vpop.permute.xlu1 %1315  ;;  %v2447_v56 = vpop.permute.xlu2 %1325 }
 0x2c4   : > { %v1349_v0 = vmul.f32 %v1316_v26, %v1301_v61  ;;  %v1250_v26 = vld [vmem:[#allocation3 + $0x38] sm:$0xff] }
 0x2c5   : > { %v1192_v8 = vpop.permute.xlu0 %1191 }
 0x2c6   : > { %v1967_v9 = vpop.eup %1966  ;;  %v1221_v20 = vsub.f32 %v2341_v50, %v1192_v8  ;;  %v1177_v8 = vmul.f32 1.442695, %v1162_v39 }
 0x2c7   : > { %1882 = vmatmul.msk.f32.gmra.mxu3 %vm1122_vm3, %v1963_v53  ;;  %v1268_v46 = vsel %vm1122_vm3, %v1967_v9, 0.0 }
 0x2c8   : > { %v1231_v10 = vmul.f32 1.442695, %v1221_v20  ;;  %1269 = vadd.xlane.f32.xlu1 %v1268_v46  ;;  %v1306_v46 = vld [vmem:[#allocation4 + $0x30] sm:$0xff] }
 0x2ca   : > { %1968 = vpow2.f32 %v1231_v10  ;;  %1272 = vadd.xlane.f32.xlu0 %v1271_v12 }
 0x2cb   : > { %v1336_v29 = vpop.permute.xlu1 %1335  ;;  %v1341_v1 = vpop.permute.xlu2 %1340 }
 0x2cc   : > { %v1353_v6 = vmul.f32 %v1336_v29, %v1305_v2  ;;  %v1354_v33 = vmul.f32 %v1341_v1, %v1306_v46  ;;  %v1303_v29 = vld [vmem:[#allocation4 + $0x18] sm:$0xff] }
 0x2cd   : > { %v1307_v46 = vld [vmem:[#allocation4 + $0x38] sm:$0xff] }
 0x2d0   : > { %v1969_v41 = vpop.eup %1968  ;;  %1278 = vadd.xlane.f32.xlu1 %v1277_v14  ;;  %v1302_v14 = vld [vmem:[#allocation4 + $0x10] sm:$0xff] }
 0x2d1   : > { %1878 = vmatmul.msk.f32.gmra.mxu1 %vm1122_vm3, %v1969_v41  ;;  %v1265_v24 = vsel %vm1122_vm3, %v1969_v41, 0.0 }
 0x2d2   : > { %1266 = vadd.xlane.f32.xlu2 %v1265_v24 }
 0x2d3   : > { %v1217_v50 = vpop.permute.xlu0 %1216 }
 0x2d4   : > { %v1226_v16 = vsub.f32 %v2346_v55, %v1217_v50  ;;  %v1251_v55 = vmul.f32 %v2392_v35, %v1243_v30  ;;  %v1252_v35 = vmul.f32 %v2377_v13, %v1244_v32 }
 0x2d6   : > { %v1241_v17 = vmul.f32 1.442695, %v1226_v16 }
 0x2d8   : > { %1970 = vpow2.f32 %v1241_v17 }
 0x2d9   : > { %1879 = vmatmul.msk.f32.gmra.mxu1 %vm1122_vm3, %v1967_v9  ;;  %1972 = vpow2.f32 %v1177_v8 }
 0x2da   : > { %1275 = vadd.xlane.f32.xlu2 %v1274_v18 }
 0x2db   : > { %v1321_v52 = vpop.permute.xlu0 %1320 }
 0x2dc   : > { %v1350_v39 = vmul.f32 %v1321_v52, %v1302_v14 }
 0x2de   : > { %v1971_v49 = vpop.eup %1970 }
 0x2df   : > { %1883 = vmatmul.msk.f32.gmra.mxu3 %vm1122_vm3, %v1971_v49  ;;  %v1280_v22 = vsel %vm1122_vm3, %v1971_v49, 0.0  ;;  %v1973_v18 = vpop.eup %1972 }
 0x2e0   : > { %1281 = vadd.xlane.f32.xlu0 %v1280_v22  ;;  %v1258_v30 = vmul.f32 %v1973_v18, %v1250_v26 }
 0x2e1   : > { %1880 = vmatmul.msk.f32.gmra.mxu1 %vm1122_vm3, %v1965_v7  ;;  %v1253_v7 = vmul.f32 %v2402_v27, %v1245_v44  ;;  %v1248_v27 = vld [vmem:[#allocation3 + $0x28] sm:$0xff] }
 0x2e2   : > { %v1256_v34 = vmul.f32 %v2384_v19, %v1248_v27 }
 0x2e3   : > { %v2445_v54 = vpop.permute.xlu0 %1330 }
 0x30d   : > { %v1261_v36 = vpop.xlane.xlu1 %1260 }
 0x30e   : > { %v1283_v28 = vadd.f32 %v1261_v36, %v1251_v55  ;;  %v1351_v36 = vmul.f32 %v2447_v56, %v1303_v29 }
 0x310   : > { %1292 = vst.msk [vmem:[#allocation3] sm:$0xff] %vm545_vm8, %v1283_v28 }
 0x316   : > { %v1405_v48 = vpop.f32.mrf.mxu1 }
 0x317   : > { %v1429_v51 = vadd.f32 %v1405_v48, %v1348_v45  ;;  %v1464_v63 = vld [vmem:[#allocation3] sm:$0xff] }
 0x318   : > { %1474 = vperm.xlu0 %1939, %v1464_v63   ;;  %v1304_v45 = vld [vmem:[#allocation4 + $0x20] sm:$0xff] }
 0x319   : > { %1437 = vst.msk [vmem:[#allocation4] sm:$0xff] %vm562_vm1, %v1429_v51  ;;  %v1352_v48 = vmul.f32 %v2445_v54, %v1304_v45 }
 0x335   : > { %v1264_v57 = vpop.xlane.xlu0 %1263 }
 0x336   : > { %v1284_v5 = vadd.f32 %v1264_v57, %v1252_v35 }
 0x338   : > { %1293 = vst.msk [vmem:[#allocation3 + $0x8] sm:$0xff] %vm545_vm8, %v1284_v5 }
 0x33b   : > { %v1270_v38 = vpop.xlane.xlu1 %1269 }
 0x33c   : > { %v1286_v11 = vadd.f32 %v1270_v38, %v1254_v31  ;;  %v1456_v38 = vld [vmem:[#allocation4] sm:$0xff] }
 0x33d   : > { %v1273_v21 = vpop.xlane.xlu0 %1272 }
 0x33e   : > { %1295 = vst.msk [vmem:[#allocation3 + $0x18] sm:$0xff] %vm545_vm8, %v1286_v11  ;;  %v1287_v13 = vadd.f32 %v1273_v21, %v1255_v62  ;;  %v1408_v3 = vpop.f32.mrf.mxu1 }
 0x33f   : > { %v1430_v40 = vadd.f32 %v1408_v3, %v1349_v0  ;;  %v1465_v15 = vld [vmem:[#allocation3 + $0x8] sm:$0xff] }
 0x340   : > { %1296 = vst.msk [vmem:[#allocation3 + $0x20] sm:$0xff] %vm545_vm8, %v1287_v13  ;;  %1479 = vperm.xlu1 %1940, %v1465_v15  }
 0x341   : > { %1438 = vst.msk [vmem:[#allocation4 + $0x8] sm:$0xff] %vm562_vm1, %v1430_v40 }
 0x342   : > { %v1420_v37 = vpop.f32.mrf.mxu3 }
 0x343   : > { %v1434_v47 = vadd.f32 %v1420_v37, %v1353_v6  ;;  %v1279_v23 = vpop.xlane.xlu1 %1278 }
 0x344   : > { %v1289_v53 = vadd.f32 %v1279_v23, %v1257_v58 }
 0x345   : > { %1442 = vst.msk [vmem:[#allocation4 + $0x28] sm:$0xff] %vm562_vm1, %v1434_v47  ;;  %v1267_v9 = vpop.xlane.xlu2 %1266  ;;  %v1467_v20 = vld [vmem:[#allocation3 + $0x18] sm:$0xff] }
 0x346   : > { %1298 = vst.msk [vmem:[#allocation3 + $0x30] sm:$0xff] %vm545_vm8, %v1289_v53  ;;  %v1285_v10 = vadd.f32 %v1267_v9, %v1253_v7  ;;  %1489 = vperm.xlu0 %1939, %v1467_v20  }
 0x347   : > { %v1468_v12 = vld [vmem:[#allocation3 + $0x20] sm:$0xff] }
 0x348   : > { %1294 = vst.msk [vmem:[#allocation3 + $0x10] sm:$0xff] %vm545_vm8, %v1285_v10  ;;  %1494 = vperm.xlu1 %1940, %v1468_v12  }
 0x34a   : > { %v1423_v41 = vpop.f32.mrf.mxu3 }
 0x34b   : > { %v1435_v25 = vadd.f32 %v1423_v41, %v1354_v33 }
 0x34d   : > { %1443 = vst.msk [vmem:[#allocation4 + $0x30] sm:$0xff] %vm562_vm1, %v1435_v25  ;;  %v1276_v24 = vpop.xlane.xlu2 %1275  ;;  %v1470_v50 = vld [vmem:[#allocation3 + $0x30] sm:$0xff] }
 0x34e   : > { %v1288_v16 = vadd.f32 %v1276_v24, %v1256_v34  ;;  %v1411_v17 = vpop.f32.mrf.mxu1  ;;  %1504 = vperm.xlu0 %1939, %v1470_v50  }
 0x34f   : > { %v1431_v49 = vadd.f32 %v1411_v17, %v1350_v39  ;;  %v1466_v22 = vld [vmem:[#allocation3 + $0x10] sm:$0xff] }
 0x350   : > { %1297 = vst.msk [vmem:[#allocation3 + $0x28] sm:$0xff] %vm545_vm8, %v1288_v16  ;;  %1484 = vperm.xlu2 %1941, %v1466_v22  }
 0x351   : > { %1439 = vst.msk [vmem:[#allocation4 + $0x10] sm:$0xff] %vm562_vm1, %v1431_v49 }
 0x353   : > { %v1282_v19 = vpop.xlane.xlu0 %1281 }
 0x354   : > { %v1290_v55 = vadd.f32 %v1282_v19, %v1258_v30 }
 0x356   : > { %1299 = vst.msk [vmem:[#allocation3 + $0x38] sm:$0xff] %vm545_vm8, %v1290_v55  ;;  %v1414_v28 = vpop.f32.mrf.mxu1 }
 0x357   : > { %v1432_v42 = vadd.f32 %v1414_v28, %v1351_v36  ;;  %v1469_v43 = vld [vmem:[#allocation3 + $0x28] sm:$0xff] }
 0x358   : > { %1499 = vperm.xlu2 %1941, %v1469_v43   ;;  %v1458_v8 = vld [vmem:[#allocation4 + $0x10] sm:$0xff] }
 0x359   : > { %1440 = vst.msk [vmem:[#allocation4 + $0x18] sm:$0xff] %vm562_vm1, %v1432_v42 }
 0x35d   : > { %v1471_v51 = vld [vmem:[#allocation3 + $0x38] sm:$0xff] }
 0x35e   : > { %v1417_v63 = vpop.f32.mrf.mxu1  ;;  %1509 = vperm.xlu1 %1940, %v1471_v51  }
 0x35f   : > { %v1433_v52 = vadd.f32 %v1417_v63, %v1352_v48  ;;  %v1457_v48 = vld [vmem:[#allocation4 + $0x8] sm:$0xff] }
 0x360   : > { %1345 = vperm.xlu2 %1941, %v1973_v18  }
 0x361   : > { %1441 = vst.msk [vmem:[#allocation4 + $0x20] sm:$0xff] %vm562_vm1, %v1433_v52 }
 0x362   : > { %v1426_v16 = vpop.f32.mrf.mxu3 }
 0x38a   : > { %v1475_v32 = vpop.permute.xlu0 %1474 }
 0x38b   : > { %1974 = vrcp.f32 %v1475_v32  ;;  %v1523_v5 = vand.u32 2147483648, %v1475_v32  ;;  %v1521_v60 = vand.u32 2147483647, %v1475_v32  ;;  %vm1517_vm13 = vweird.f32 %v1475_v32 }
 0x38d   : > { %v1524_v54 = vor.u32 1.1754944e-38, %v1523_v5  ;;  %vm1522_vm15 = vcmp.eq.f32.partialorder %v1521_v60, 8.507059e+37 }
 0x391   : > { %v1975_v56 = vpop.eup %1974 }
 0x392   : > { %v1513_v35 = vmul.f32 %v1975_v56, %v1475_v32  ;;  %vm1518_vm12 = vweird.f32 %v1975_v56 }
 0x393   : > { %vm1519_vm14 = vmor %vm1517_vm13, %vm1518_vm12 }
 0x394   : > { %v1514_v57 = vsub.f32 1.0, %v1513_v35  ;;  %v1461_v35 = vld [vmem:[#allocation4 + $0x28] sm:$0xff] }
 0x396   : > { %v1515_v59 = vmul.f32 %v1975_v56, %v1514_v57 }
 0x398   : > { %v1516_v61 = vadd.f32 %v1975_v56, %v1515_v59 }
 0x39a   : > { %v1520_v31 = vsel %vm1519_vm14, %v1975_v56, %v1516_v61 }
 0x39b   : > { %v1525_v11 = vsel %vm1522_vm15, %v1524_v54, %v1520_v31 }
 0x39c   : > { %v1526_v62 = vmul.f32 %v1525_v11, %v1456_v38 }
 0x39e   : > { %1633 = vst.msk [vmem:[%s2477_s12] sm:$0xff] %vm562_vm1, %v1526_v62 }
 0x3aa   : > { %v1485_v0 = vpop.permute.xlu2 %1484 }
 0x3ab   : > { %1976 = vrcp.f32 %v1485_v0  ;;  %v1553_v40 = vand.u32 2147483648, %v1485_v0  ;;  %v1551_v4 = vand.u32 2147483647, %v1485_v0  ;;  %vm1547_vm2 = vweird.f32 %v1485_v0 }
 0x3ad   : > { %v1554_v58 = vor.u32 1.1754944e-38, %v1553_v40  ;;  %vm1552_vm4 = vcmp.eq.f32.partialorder %v1551_v4, 8.507059e+37 }
 0x3b1   : > { %v1977_v1 = vpop.eup %1976 }
 0x3b2   : > { %v1543_v21 = vmul.f32 %v1977_v1, %v1485_v0  ;;  %v1480_v2 = vpop.permute.xlu1 %1479  ;;  %v1500_v13 = vpop.permute.xlu2 %1499  ;;  %vm1548_vm0 = vweird.f32 %v1977_v1 }
 0x3b3   : > { %1978 = vrcp.f32 %v1480_v2  ;;  %vm1549_vm3 = vmor %vm1547_vm2, %vm1548_vm0  ;;  %v1536_v27 = vand.u32 2147483647, %v1480_v2  ;;  %v1538_v14 = vand.u32 2147483648, %v1480_v2  ;;  %v1596_v25 = vand.u32 2147483647, %v1500_v13 }
 0x3b4   : > { %v1544_v3 = vsub.f32 1.0, %v1543_v21  ;;  %1980 = vrcp.f32 %v1500_v13  ;;  %v1598_v39 = vand.u32 2147483648, %v1500_v13  ;;  %vm1532_vm6 = vweird.f32 %v1480_v2  ;;  %v1459_v21 = vld [vmem:[#allocation4 + $0x18] sm:$0xff] }
 0x3b5   : > { %vm1592_vm7 = vweird.f32 %v1500_v13  ;;  %vm2489_vm9 = vcmp.eq.f32.partialorder %v1536_v27, 8.507059e+37  ;;  %v1539_v30 = vor.u32 1.1754944e-38, %v1538_v14  ;;  %vm2496_vm11 = vcmp.eq.f32.partialorder %v1596_v25, 8.507059e+37 }
 0x3b6   : > { %v1545_v15 = vmul.f32 %v1977_v1, %v1544_v3  ;;  %v1599_v42 = vor.u32 1.1754944e-38, %v1598_v39 }
 0x3b8   : > { %v1546_v6 = vadd.f32 %v1977_v1, %v1545_v15  ;;  %v2481_v44 = vpop.permute.xlu0 %1489 }
 0x3b9   : > { %v1979_v37 = vpop.eup %1978  ;;  %1982 = vrcp.f32 %v2481_v44  ;;  %v1566_v45 = vand.u32 2147483647, %v2481_v44  ;;  %v1568_v52 = vand.u32 2147483648, %v2481_v44  ;;  %vm1562_vm14 = vweird.f32 %v2481_v44 }
 0x3ba   : > { %v1981_v47 = vpop.eup %1980  ;;  %v1550_v23 = vsel %vm1549_vm3, %v1977_v1, %v1546_v6  ;;  %v1528_v53 = vmul.f32 %v1979_v37, %v1480_v2  ;;  %v2484_v7 = vpop.permute.xlu1 %1494  ;;  %vm1533_vm5 = vweird.f32 %v1979_v37 }
 0x3bb   : > { %v1555_v9 = vsel %vm1552_vm4, %v1554_v58, %v1550_v23  ;;  %v1588_v20 = vmul.f32 %v1981_v47, %v1500_v13  ;;  %v1346_v10 = vpop.permute.xlu2 %1345  ;;  %1984 = vrcp.f32 %v2484_v7  ;;  %vm1593_vm8 = vweird.f32 %v1981_v47  ;;  %vm1534_vm10 = vmor %vm1532_vm6, %vm1533_vm5 }
 0x3bc   : > { %v1556_v12 = vmul.f32 %v1555_v9, %v1458_v8  ;;  %v1529_v33 = vsub.f32 1.0, %v1528_v53  ;;  %v1355_v24 = vmul.f32 %v1346_v10, %v1307_v46  ;;  %vm1594_vm12 = vmor %vm1592_vm7, %vm1593_vm8  ;;  %v1583_v54 = vand.u32 2147483648, %v2484_v7 }
 0x3bd   : > { %v1589_v41 = vsub.f32 1.0, %v1588_v20  ;;  %v1569_v38 = vor.u32 1.1754944e-38, %v1568_v52  ;;  %v1581_v62 = vand.u32 2147483647, %v2484_v7  ;;  %vm1567_vm2 = vcmp.eq.f32.partialorder %v1566_v45, 8.507059e+37  ;;  %v1462_v20 = vld [vmem:[#allocation4 + $0x30] sm:$0xff] }
 0x3be   : > { %1635 = vst.msk [vmem:[%s2477_s12 + $0x10] sm:$0xff] %vm562_vm1, %v1556_v12  ;;  %v1530_v34 = vmul.f32 %v1979_v37, %v1529_v33  ;;  %v1436_v26 = vadd.f32 %v1426_v16, %v1355_v24  ;;  %vm1577_vm3 = vweird.f32 %v2484_v7  ;;  %v1584_v40 = vor.u32 1.1754944e-38, %v1583_v54 }
 0x3bf   : > { %v1983_v50 = vpop.eup %1982  ;;  %v1590_v17 = vmul.f32 %v1981_v47, %v1589_v41  ;;  %vm1582_vm5 = vcmp.eq.f32.partialorder %v1581_v62, 8.507059e+37 }
 0x3c0   : > { %v1531_v18 = vadd.f32 %v1979_v37, %v1530_v34  ;;  %v1558_v22 = vmul.f32 %v1983_v50, %v2481_v44  ;;  %v2494_v29 = vpop.permute.xlu0 %1504  ;;  %1444 = vst.msk [vmem:[#allocation4 + $0x38] sm:$0xff] %vm562_vm1, %v1436_v26  ;;  %vm1563_vm13 = vweird.f32 %v1983_v50  ;;  %v1460_v44 = vld [vmem:[#allocation4 + $0x20] sm:$0xff] }
 0x3c1   : > { %v1591_v19 = vadd.f32 %v1981_v47, %v1590_v17  ;;  %1986 = vrcp.f32 %v2494_v29  ;;  %v1985_v36 = vpop.eup %1984  ;;  %vm1564_vm15 = vmor %vm1562_vm14, %vm1563_vm13  ;;  %v1613_v6 = vand.u32 2147483648, %v2494_v29  ;;  %vm1607_vm7 = vweird.f32 %v2494_v29 }
 0x3c2   : > { %v1535_v28 = vsel %vm1534_vm10, %v1979_v37, %v1531_v18  ;;  %v1559_v43 = vsub.f32 1.0, %v1558_v22  ;;  %v1573_v32 = vmul.f32 %v1985_v36, %v2484_v7  ;;  %vm1578_vm0 = vweird.f32 %v1985_v36 }
 0x3c3   : > { %v1540_v51 = vsel %vm2489_vm9, %v1539_v30, %v1535_v28  ;;  %v1595_v63 = vsel %vm1594_vm12, %v1981_v47, %v1591_v19  ;;  %vm1579_vm4 = vmor %vm1577_vm3, %vm1578_vm0  ;;  %v1611_v47 = vand.u32 2147483647, %v2494_v29  ;;  %v1614_v7 = vor.u32 1.1754944e-38, %v1613_v6 }
 0x3c4   : > { %v1541_v56 = vmul.f32 %v1540_v51, %v1457_v48  ;;  %v1600_v57 = vsel %vm2496_vm11, %v1599_v42, %v1595_v63  ;;  %v1560_v5 = vmul.f32 %v1983_v50, %v1559_v43  ;;  %v1574_v60 = vsub.f32 1.0, %v1573_v32 }
 0x3c5   : > { %v1601_v59 = vmul.f32 %v1600_v57, %v1461_v35  ;;  %vm1612_vm9 = vcmp.eq.f32.partialorder %v1611_v47, 8.507059e+37 }
 0x3c6   : > { %1634 = vst.msk [vmem:[%s2477_s12 + $0x8] sm:$0xff] %vm562_vm1, %v1541_v56  ;;  %v1561_v61 = vadd.f32 %v1983_v50, %v1560_v5  ;;  %v1575_v11 = vmul.f32 %v1985_v36, %v1574_v60 }
 0x3c7   : > { %v1987_v31 = vpop.eup %1986  ;;  %1638 = vst.msk [vmem:[%s2477_s12 + $0x28] sm:$0xff] %vm562_vm1, %v1601_v59 }
 0x3c8   : > { %v1565_v0 = vsel %vm1564_vm15, %v1983_v50, %v1561_v61  ;;  %v1603_v1 = vmul.f32 %v1987_v31, %v2494_v29  ;;  %v1576_v13 = vadd.f32 %v1985_v36, %v1575_v11  ;;  %vm1608_vm6 = vweird.f32 %v1987_v31  ;;  %v1463_v50 = vld [vmem:[#allocation4 + $0x38] sm:$0xff] }
 0x3c9   : > { %v1570_v2 = vsel %vm1567_vm2, %v1569_v38, %v1565_v0  ;;  %vm1609_vm8 = vmor %vm1607_vm7, %vm1608_vm6 }
 0x3ca   : > { %v1571_v3 = vmul.f32 %v1570_v2, %v1459_v21  ;;  %v1604_v15 = vsub.f32 1.0, %v1603_v1  ;;  %v1580_v4 = vsel %vm1579_vm4, %v1985_v36, %v1576_v13 }
 0x3cb   : > { %v1585_v37 = vsel %vm1582_vm5, %v1584_v40, %v1580_v4 }
 0x3cc   : > { %1636 = vst.msk [vmem:[%s2477_s12 + $0x18] sm:$0xff] %vm562_vm1, %v1571_v3  ;;  %v1605_v58 = vmul.f32 %v1987_v31, %v1604_v15  ;;  %v1586_v23 = vmul.f32 %v1585_v37, %v1460_v44 }
 0x3ce   : > { %v1606_v53 = vadd.f32 %v1987_v31, %v1605_v58  ;;  %1637 = vst.msk [vmem:[%s2477_s12 + $0x20] sm:$0xff] %vm562_vm1, %v1586_v23 }
 0x3d0   : > { %v1610_v8 = vsel %vm1609_vm8, %v1987_v31, %v1606_v53  ;;  %v1510_v9 = vpop.permute.xlu1 %1509 }
 0x3d1   : > { %v1615_v46 = vsel %vm1612_vm9, %v1614_v7, %v1610_v8  ;;  %1988 = vrcp.f32 %v1510_v9  ;;  %v1628_v14 = vand.u32 2147483648, %v1510_v9  ;;  %v1626_v25 = vand.u32 2147483647, %v1510_v9 }
 0x3d2   : > { %v1616_v10 = vmul.f32 %v1615_v46, %v1462_v20  ;;  %vm1622_vm11 = vweird.f32 %v1510_v9 }
 0x3d3   : > { %v1629_v39 = vor.u32 1.1754944e-38, %v1628_v14  ;;  %vm1627_vm13 = vcmp.eq.f32.partialorder %v1626_v25, 8.507059e+37 }
 0x3d4   : > { %1639 = vst.msk [vmem:[%s2477_s12 + $0x30] sm:$0xff] %vm562_vm1, %v1616_v10 }
 0x3d7   : > { %v1989_v12 = vpop.eup %1988 }
 0x3d8   : > { %v1618_v33 = vmul.f32 %v1989_v12, %v1510_v9  ;;  %vm1623_vm10 = vweird.f32 %v1989_v12 }
 0x3d9   : > { %vm1624_vm12 = vmor %vm1622_vm11, %vm1623_vm10 }
 0x3da   : > { %v1619_v27 = vsub.f32 1.0, %v1618_v33 }
 0x3dc   : > { %v1620_v41 = vmul.f32 %v1989_v12, %v1619_v27 }
 0x3de   : > { %v1621_v34 = vadd.f32 %v1989_v12, %v1620_v41 }
 0x3e0   : > { %v1625_v24 = vsel %vm1624_vm12, %v1989_v12, %v1621_v34 }
 0x3e1   : > { %v1630_v16 = vsel %vm1627_vm13, %v1629_v39, %v1625_v24 }
 0x3e2   : > { %v1631_v17 = vmul.f32 %v1630_v16, %v1463_v50 }
 0x3e4   : > { %1640 = vst.msk [vmem:[%s2477_s12 + $0x38] sm:$0xff] %vm562_vm1, %v1631_v17 }
 0x3e5 PF: > { %s17_s26 = sadd.s32 1, %s2012_s26   ;;  %s2550_s24 = smov %s2008_s25 }
 0x3e6   : > { %p14_p5 = scmp.ge.s32.totalorder %s17_s26, 18   ;;  %s2551_s25 = smov %s2553_s27 }
 0x3e8   :  { %16 = sbr.rel (!%p14_p5) target bundleno = 2 (0x2), region = 108 }

// kernel: vanilla_attention_forward.5
= control target key start
LH: loop header
LB: loop body
LE: loop exit
PB: predicated region body
PF: predicated region fallthrough
CT: control target
= control target key end

     0   :  { %s456_s0 = inlined_call_operand.vmem [shape: f32[128,128], index: 0, kind: input, shape index: {}]   ;;  %s457_s1 = inlined_call_operand.vmem [shape: f32[128,128], index: 1, kind: input, shape index: {}]   ;;  %s458_s2 = inlined_call_operand.vmem [shape: f32[1,128], index: 2, kind: input, shape index: {}]   ;;  %s459_s3 = inlined_call_operand.hbm [shape: f32[128,128], index: 3, kind: output, shape index: {}]  }
   0x1   :  { %v82_v0 = vld [vmem:[%s457_s1 + $0x78] sm:$0xff]  ;;  %v81_v1 = vld [vmem:[%s457_s1 + $0x70] sm:$0xff]  ;;  %v80_v2 = vld [vmem:[%s457_s1 + $0x68] sm:$0xff] }
   0x2   :  { %254 = vmatpush.msra.mxu2 %v82_v0  ;;  %255 = vmatpush.msra.mxu3 %v82_v0  ;;  %v79_v3 = vld [vmem:[%s457_s1 + $0x60] sm:$0xff]  ;;  %v78_v4 = vld [vmem:[%s457_s1 + $0x58] sm:$0xff] }
   0x3   :  { %83 = vmatpush.msra.mxu0 %v82_v0  ;;  %253 = vmatpush.msra.mxu1 %v82_v0 }
   0x4   :  { %257 = vmatpush.msra.mxu2 %v81_v1  ;;  %258 = vmatpush.msra.mxu3 %v81_v1 }
   0x5   :  { %84 = vmatpush.msra.mxu0 %v81_v1  ;;  %256 = vmatpush.msra.mxu1 %v81_v1 }
   0x6   :  { %260 = vmatpush.msra.mxu2 %v80_v2  ;;  %261 = vmatpush.msra.mxu3 %v80_v2 }
   0x7   :  { %85 = vmatpush.msra.mxu0 %v80_v2  ;;  %259 = vmatpush.msra.mxu1 %v80_v2 }
   0x8   :  { %263 = vmatpush.msra.mxu2 %v79_v3  ;;  %264 = vmatpush.msra.mxu3 %v79_v3 }
   0x9   :  { %8 = vsyncpa [#allocation4], 0  ;;  %v77_v5 = vld [vmem:[%s457_s1 + $0x50] sm:$0xff]  ;;  %86 = vmatpush.msra.mxu0 %v79_v3  ;;  %262 = vmatpush.msra.mxu1 %v79_v3  ;;  %v76_v6 = vld [vmem:[%s457_s1 + $0x48] sm:$0xff]  ;;  %s241_s24 = sshll.u32 %s459_s3, 4  ;;  %s332_s25 = smov 128   ;;  %s242_s24 = int_to_ptr.hbm [resolvable:$true] %s241_s24 }
   0xa   :  { %266 = vmatpush.msra.mxu2 %v78_v4  ;;  %267 = vmatpush.msra.mxu3 %v78_v4  ;;  %v75_v7 = vld [vmem:[%s457_s1 + $0x40] sm:$0xff]  ;;  %v74_v8 = vld [vmem:[%s457_s1 + $0x38] sm:$0xff]  ;;  %v73_v9 = vld [vmem:[%s457_s1 + $0x30] sm:$0xff]  ;;  %s333_s26 = smov 8  }
   0xb   :  { %87 = vmatpush.msra.mxu0 %v78_v4  ;;  %265 = vmatpush.msra.mxu1 %v78_v4  ;;  %v72_v10 = vld [vmem:[%s457_s1 + $0x28] sm:$0xff]  ;;  %v71_v11 = vld [vmem:[%s457_s1 + $0x20] sm:$0xff]  ;;  %v70_v12 = vld [vmem:[%s457_s1 + $0x18] sm:$0xff] }
   0xc   :  { %269 = vmatpush.msra.mxu2 %v77_v5  ;;  %270 = vmatpush.msra.mxu3 %v77_v5  ;;  %v69_v13 = vld [vmem:[%s457_s1 + $0x10] sm:$0xff]  ;;  %v68_v14 = vld [vmem:[%s457_s1 + $0x8] sm:$0xff]  ;;  %v67_v15 = vld [vmem:[%s457_s1] sm:$0xff] }
   0xd   :  { %88 = vmatpush.msra.mxu0 %v77_v5  ;;  %268 = vmatpush.msra.mxu1 %v77_v5  ;;  %v59_v16 = vld [vmem:[%s456_s0 + $0x40] sm:$0xff]  ;;  %v60_v20 = vld [vmem:[%s456_s0 + $0x48] sm:$0xff]  ;;  %v61_v24 = vld [vmem:[%s456_s0 + $0x50] sm:$0xff] }
   0xe   :  { %272 = vmatpush.msra.mxu2 %v76_v6  ;;  %273 = vmatpush.msra.mxu3 %v76_v6  ;;  %v63_v17 = vld [vmem:[%s456_s0 + $0x60] sm:$0xff]  ;;  %v64_v21 = vld [vmem:[%s456_s0 + $0x68] sm:$0xff]  ;;  %v65_v25 = vld [vmem:[%s456_s0 + $0x70] sm:$0xff] }
   0xf   :  { %89 = vmatpush.msra.mxu0 %v76_v6  ;;  %271 = vmatpush.msra.mxu1 %v76_v6  ;;  %v51_v18 = vld [vmem:[%s456_s0] sm:$0xff]  ;;  %v52_v22 = vld [vmem:[%s456_s0 + $0x8] sm:$0xff]  ;;  %v53_v26 = vld [vmem:[%s456_s0 + $0x10] sm:$0xff] }
  0x10   :  { %275 = vmatpush.msra.mxu2 %v75_v7  ;;  %276 = vmatpush.msra.mxu3 %v75_v7  ;;  %v55_v19 = vld [vmem:[%s456_s0 + $0x20] sm:$0xff]  ;;  %v56_v23 = vld [vmem:[%s456_s0 + $0x28] sm:$0xff]  ;;  %v57_v27 = vld [vmem:[%s456_s0 + $0x30] sm:$0xff] }
  0x11   :  { %90 = vmatpush.msra.mxu0 %v75_v7  ;;  %274 = vmatpush.msra.mxu1 %v75_v7  ;;  %v62_v28 = vld [vmem:[%s456_s0 + $0x58] sm:$0xff]  ;;  %v304_v32 = vld [vmem:[%s458_s2] ss:$0 sm:$0xff] }
  0x12   :  { %278 = vmatpush.msra.mxu2 %v74_v8  ;;  %279 = vmatpush.msra.mxu3 %v74_v8  ;;  %v66_v29 = vld [vmem:[%s456_s0 + $0x78] sm:$0xff] }
  0x13   :  { %91 = vmatpush.msra.mxu0 %v74_v8  ;;  %277 = vmatpush.msra.mxu1 %v74_v8  ;;  %v54_v30 = vld [vmem:[%s456_s0 + $0x18] sm:$0xff] }
  0x14   :  { %281 = vmatpush.msra.mxu2 %v73_v9  ;;  %282 = vmatpush.msra.mxu3 %v73_v9  ;;  %v58_v31 = vld [vmem:[%s456_s0 + $0x38] sm:$0xff]  ;;  %s331_s0 = smov [#allocation3]  }
  0x15   :  { %92 = vmatpush.msra.mxu0 %v73_v9  ;;  %280 = vmatpush.msra.mxu1 %v73_v9  ;;  %s239_s2 = sshll.u32 %s331_s0, 4  ;;  %s240_s2 = int_to_ptr.vmem [resolvable:$true] %s239_s2 }
  0x16   :  { %284 = vmatpush.msra.mxu2 %v72_v10  ;;  %285 = vmatpush.msra.mxu3 %v72_v10 }
  0x17   :  { %93 = vmatpush.msra.mxu0 %v72_v10  ;;  %283 = vmatpush.msra.mxu1 %v72_v10 }
  0x18   :  { %287 = vmatpush.msra.mxu2 %v71_v11  ;;  %288 = vmatpush.msra.mxu3 %v71_v11 }
  0x19   :  { %94 = vmatpush.msra.mxu0 %v71_v11  ;;  %286 = vmatpush.msra.mxu1 %v71_v11 }
  0x1a   :  { %290 = vmatpush.msra.mxu2 %v70_v12  ;;  %291 = vmatpush.msra.mxu3 %v70_v12 }
  0x1b   :  { %95 = vmatpush.msra.mxu0 %v70_v12  ;;  %289 = vmatpush.msra.mxu1 %v70_v12 }
  0x1c   :  { %293 = vmatpush.msra.mxu2 %v69_v13  ;;  %294 = vmatpush.msra.mxu3 %v69_v13 }
  0x1d   :  { %96 = vmatpush.msra.mxu0 %v69_v13  ;;  %292 = vmatpush.msra.mxu1 %v69_v13 }
  0x1e   :  { %296 = vmatpush.msra.mxu2 %v68_v14  ;;  %297 = vmatpush.msra.mxu3 %v68_v14 }
  0x1f   :  { %97 = vmatpush.msra.mxu0 %v68_v14  ;;  %295 = vmatpush.msra.mxu1 %v68_v14 }
  0x20   :  { %299 = vmatpush.msra.mxu2 %v67_v15  ;;  %300 = vmatpush.msra.mxu3 %v67_v15 }
  0x21   :  { %123 = vmatmul.f32.vlgmr.msra.gmra.mxu2 %v59_v16  ;;  %135 = vmatmul.f32.vlgmr.msra.gmra.mxu3 %v63_v17 }
  0x22   :  { %98 = vmatpush.msra.mxu0 %v67_v15  ;;  %298 = vmatpush.msra.mxu1 %v67_v15 }
  0x23   :  { %99 = vmatmul.f32.vlgmr.msra.gmra.mxu0 %v51_v18  ;;  %111 = vmatmul.f32.vlgmr.msra.gmra.mxu1 %v55_v19 }
  0x29   :  { %126 = vmatmul.f32.gmra.mxu2 %v60_v20  ;;  %138 = vmatmul.f32.gmra.mxu3 %v64_v21 }
  0x2b   :  { %102 = vmatmul.f32.gmra.mxu0 %v52_v22  ;;  %114 = vmatmul.f32.gmra.mxu1 %v56_v23 }
  0x31   :  { %129 = vmatmul.f32.gmra.mxu2 %v61_v24  ;;  %141 = vmatmul.f32.gmra.mxu3 %v65_v25 }
  0x33   :  { %105 = vmatmul.f32.gmra.mxu0 %v53_v26  ;;  %117 = vmatmul.f32.gmra.mxu1 %v57_v27 }
  0x39   :  { %132 = vmatmul.f32.gmra.mxu2 %v62_v28  ;;  %144 = vmatmul.f32.gmra.mxu3 %v66_v29 }
  0x3b   :  { %108 = vmatmul.f32.gmra.mxu0 %v54_v30  ;;  %120 = vmatmul.f32.gmra.mxu1 %v58_v31 }
  0xa0   :  { %v100_v33 = vpop.f32.mrf.mxu0  ;;  %v112_v34 = vpop.f32.mrf.mxu1 }
  0xa1   :  { %v203_v35 = vadd.f32 %v304_v32, %v100_v33  ;;  %v207_v36 = vadd.f32 %v304_v32, %v112_v34 }
  0xa3   :  { %219 = vst [vmem:[#allocation3] sm:$0xff] %v203_v35 }
  0xa4   :  { %223 = vst [vmem:[#allocation3 + $0x20] sm:$0xff] %v207_v36  ;;  %v124_v37 = vpop.f32.mrf.mxu2  ;;  %v136_v38 = vpop.f32.mrf.mxu3 }
  0xa5   :  { %v211_v39 = vadd.f32 %v304_v32, %v124_v37  ;;  %v215_v40 = vadd.f32 %v304_v32, %v136_v38 }
  0xa7   :  { %227 = vst [vmem:[#allocation3 + $0x40] sm:$0xff] %v211_v39 }
  0xa8   :  { %231 = vst [vmem:[#allocation3 + $0x60] sm:$0xff] %v215_v40  ;;  %v103_v41 = vpop.f32.mrf.mxu0  ;;  %v115_v42 = vpop.f32.mrf.mxu1 }
  0xa9   :  { %v204_v43 = vadd.f32 %v304_v32, %v103_v41  ;;  %v208_v44 = vadd.f32 %v304_v32, %v115_v42 }
  0xab   :  { %220 = vst [vmem:[#allocation3 + $0x8] sm:$0xff] %v204_v43 }
  0xac   :  { %224 = vst [vmem:[#allocation3 + $0x28] sm:$0xff] %v208_v44  ;;  %v127_v45 = vpop.f32.mrf.mxu2  ;;  %v139_v46 = vpop.f32.mrf.mxu3 }
  0xad   :  { %v212_v47 = vadd.f32 %v304_v32, %v127_v45  ;;  %v216_v48 = vadd.f32 %v304_v32, %v139_v46 }
  0xaf   :  { %228 = vst [vmem:[#allocation3 + $0x48] sm:$0xff] %v212_v47 }
  0xb0   :  { %232 = vst [vmem:[#allocation3 + $0x68] sm:$0xff] %v216_v48  ;;  %v106_v49 = vpop.f32.mrf.mxu0  ;;  %v118_v50 = vpop.f32.mrf.mxu1 }
  0xb1   :  { %v205_v51 = vadd.f32 %v304_v32, %v106_v49  ;;  %v209_v52 = vadd.f32 %v304_v32, %v118_v50 }
  0xb3   :  { %221 = vst [vmem:[#allocation3 + $0x10] sm:$0xff] %v205_v51 }
  0xb4   :  { %225 = vst [vmem:[#allocation3 + $0x30] sm:$0xff] %v209_v52  ;;  %v130_v53 = vpop.f32.mrf.mxu2  ;;  %v142_v54 = vpop.f32.mrf.mxu3 }
  0xb5   :  { %v213_v55 = vadd.f32 %v304_v32, %v130_v53  ;;  %v217_v56 = vadd.f32 %v304_v32, %v142_v54 }
  0xb7   :  { %229 = vst [vmem:[#allocation3 + $0x50] sm:$0xff] %v213_v55 }
  0xb8   :  { %233 = vst [vmem:[#allocation3 + $0x70] sm:$0xff] %v217_v56  ;;  %v109_v57 = vpop.f32.mrf.mxu0  ;;  %v121_v58 = vpop.f32.mrf.mxu1 }
  0xb9   :  { %v206_v59 = vadd.f32 %v304_v32, %v109_v57  ;;  %v210_v60 = vadd.f32 %v304_v32, %v121_v58 }
  0xbb   :  { %222 = vst [vmem:[#allocation3 + $0x18] sm:$0xff] %v206_v59 }
  0xbc   :  { %226 = vst [vmem:[#allocation3 + $0x38] sm:$0xff] %v210_v60  ;;  %v133_v61 = vpop.f32.mrf.mxu2  ;;  %v145_v62 = vpop.f32.mrf.mxu3 }
  0xbd   :  { %v214_v63 = vadd.f32 %v304_v32, %v133_v61  ;;  %v218_v0 = vadd.f32 %v304_v32, %v145_v62 }
  0xbf   :  { %230 = vst [vmem:[#allocation3 + $0x58] sm:$0xff] %v214_v63 }
  0xc0   :  { %234 = vst [vmem:[#allocation3 + $0x78] sm:$0xff] %v218_v0 }
  0xc1   :  { %247 = dma.vmem_to_hbm [thread:$0]  %s240_s2, 2048, %s242_s24, [#allocation4], %s332_s25, %s332_s25, %s333_s26  }
  0xc2   :  { %329 = dma.done.wait [#allocation4], 2048  }
  0xc3   :  { %330 = vsyncadd [#allocation4], 4294965248 }
  0xc4   :  { %252 = vsyncpa [#allocation4], 1 }

</bundles_post_ra>
